<compile_context>
chip_gen: v7x
topology: tpu7x:2x2x1
jax: 0.10.0
libtpu: 0.0.40
codegen_flags: <defaults>
</compile_context>

<pallas_src>
import functools

import jax
import jax.numpy as jnp
from jax.experimental import pallas as pl
from jax.experimental.pallas import tpu as pltpu


# ----------------------------------------------------------------------------
# helpers
# ----------------------------------------------------------------------------
def _round_up(x, m):
    return ((x + m - 1) // m) * m


def _row_tile(M, cap=512):
    """Largest multiple-of-8 divisor of M that is <= cap (M is a multiple of 8)."""
    t = min(M, cap)
    while M % t:
        t -= 8
    return t


def _time_tile(T, cap=32):
    t = min(T, cap)
    while T % t:
        t -= 1
    return t


# ----------------------------------------------------------------------------
# Pallas kernels
# ----------------------------------------------------------------------------
def _proj_gi_kernel(x_ref, wp_ref, bp_ref, wih_ref, bih_ref, o_ref):
    """gi0 = ReLU(x @ Wp + bp) @ Wih + bih for a tile of rows (layer 0, fused)."""
    x = x_ref[...].astype(jnp.bfloat16)
    proj = jnp.dot(x, wp_ref[...], preferred_element_type=jnp.float32) + bp_ref[...]
    a = jnp.maximum(proj, 0.0).astype(jnp.bfloat16)
    gi = jnp.dot(a, wih_ref[...], preferred_element_type=jnp.float32) + bih_ref[...]
    o_ref[...] = gi


def _relu_gi_kernel(a_ref, wih_ref, bih_ref, o_ref):
    """gi = ReLU(act) @ Wih + bih for a tile of rows (layers > 0)."""
    a = jnp.maximum(a_ref[...], 0.0).astype(jnp.bfloat16)
    o_ref[...] = (
        jnp.dot(a, wih_ref[...], preferred_element_type=jnp.float32) + bih_ref[...]
    )


def _gru_kernel(gi_ref, h0_ref, whh_ref, bhh_ref, out_ref, hN_ref):
    """Recurrence over a block of Tt time steps.

    gi_ref  : (Tt, Bp, 3Hp) precomputed input gates (time-major)
    h0_ref  : (Bp, Hp)      initial hidden state
    whh_ref : (Hp, 3Hp)     recurrent weights, gate order [r, z, n] (pre-transposed)
    bhh_ref : (1, 3Hp)
    out_ref : (Tt, Bp, Hp)  hidden states for this time block
    hN_ref  : (Bp, Hp)      final hidden state; also the f32 carry across blocks
                            (constant block index -> VMEM-resident accumulator).
    """
    Hp = h0_ref.shape[-1]
    Tt = gi_ref.shape[0]
    tb = pl.program_id(0)

    @pl.when(tb == 0)
    def _():
        hN_ref[...] = h0_ref[...]

    whh = whh_ref[...]          # hoisted loads (grid-invariant weights)
    bhh = bhh_ref[...]

    def step(s, h):
        gh = jnp.dot(h, whh, preferred_element_type=jnp.float32) + bhh
        gi_s = gi_ref[s]
        r = jax.nn.sigmoid(gi_s[:, 0:Hp] + gh[:, 0:Hp])
        z = jax.nn.sigmoid(gi_s[:, Hp:2 * Hp] + gh[:, Hp:2 * Hp])
        n = jnp.tanh(gi_s[:, 2 * Hp:3 * Hp] + r * gh[:, 2 * Hp:3 * Hp])
        h_new = (1.0 - z) * n + z * h
        out_ref[s] = h_new
        return h_new

    h_last = jax.lax.fori_loop(0, Tt, step, hN_ref[...], unroll=True)
    hN_ref[...] = h_last


# ----------------------------------------------------------------------------
# pallas_call wrappers
# ----------------------------------------------------------------------------
def proj_gi_pallas(x_flat, wp_t, bp, wih_t, bih):
    """x_flat: (M, F) f32 -> gi (M, 3Hp) f32, fused projection + ReLU + input gates."""
    M, F = x_flat.shape
    Hdp = wp_t.shape[1]
    G3 = wih_t.shape[1]
    Mt = _row_tile(M)
    return pl.pallas_call(
        _proj_gi_kernel,
        out_shape=jax.ShapeDtypeStruct((M, G3), jnp.float32),
        grid_spec=pltpu.PrefetchScalarGridSpec(
            num_scalar_prefetch=0,
            grid=(M // Mt,),
            in_specs=[
                pl.BlockSpec((Mt, F), lambda i: (i, 0)),
                pl.BlockSpec((F, Hdp), lambda i: (0, 0)),
                pl.BlockSpec((1, Hdp), lambda i: (0, 0)),
                pl.BlockSpec((Hdp, G3), lambda i: (0, 0)),
                pl.BlockSpec((1, G3), lambda i: (0, 0)),
            ],
            out_specs=pl.BlockSpec((Mt, G3), lambda i: (i, 0)),
        ),
        compiler_params=pltpu.CompilerParams(
            dimension_semantics=("parallel",)),
    )(x_flat, wp_t, bp, wih_t, bih)


def relu_gi_pallas(a_flat, wih_t, bih):
    """a_flat: (M, Hp) f32 -> gi (M, 3Hp) f32 (ReLU fused)."""
    M, Hp = a_flat.shape
    G3 = wih_t.shape[1]
    Mt = _row_tile(M)
    return pl.pallas_call(
        _relu_gi_kernel,
        out_shape=jax.ShapeDtypeStruct((M, G3), jnp.float32),
        grid_spec=pltpu.PrefetchScalarGridSpec(
            num_scalar_prefetch=0,
            grid=(M // Mt,),
            in_specs=[
                pl.BlockSpec((Mt, Hp), lambda i: (i, 0)),
                pl.BlockSpec((Hp, G3), lambda i: (0, 0)),
                pl.BlockSpec((1, G3), lambda i: (0, 0)),
            ],
            out_specs=pl.BlockSpec((Mt, G3), lambda i: (i, 0)),
        ),
        compiler_params=pltpu.CompilerParams(
            dimension_semantics=("parallel",)),
    )(a_flat, wih_t, bih)


def gru_pallas(gi_tm, h0p, whh_t, bhh):
    """gi_tm: (T, Bp, 3Hp), h0p: (Bp, Hp). Returns (out (T, Bp, Hp), h_n (Bp, Hp))."""
    T, Bp, G3 = gi_tm.shape
    Hp = h0p.shape[-1]
    Tt = _time_tile(T)
    out, h_n = pl.pallas_call(
        _gru_kernel,
        out_shape=(jax.ShapeDtypeStruct((T, Bp, Hp), jnp.float32),
                   jax.ShapeDtypeStruct((Bp, Hp), jnp.float32)),
        grid_spec=pltpu.PrefetchScalarGridSpec(
            num_scalar_prefetch=0,
            grid=(T // Tt,),
            in_specs=[
                pl.BlockSpec((Tt, Bp, G3), lambda tb: (tb, 0, 0)),
                pl.BlockSpec((Bp, Hp), lambda tb: (0, 0)),
                pl.BlockSpec((Hp, G3), lambda tb: (0, 0)),
                pl.BlockSpec((1, G3), lambda tb: (0, 0)),
            ],
            out_specs=[
                pl.BlockSpec((Tt, Bp, Hp), lambda tb: (tb, 0, 0)),
                pl.BlockSpec((Bp, Hp), lambda tb: (0, 0)),
            ],
        ),
        compiler_params=pltpu.CompilerParams(
            dimension_semantics=("arbitrary",)),  # recurrent over time blocks
    )(gi_tm, h0p, whh_t, bhh)
    return out, h_n


# ----------------------------------------------------------------------------
# parameter prep: pad to lane/sublane alignment, pre-transpose, bf16 matmul weights
# ----------------------------------------------------------------------------
def prepare_params(params, hidden_size, direction=1):
    assert direction == 1, "only direction=1 supported"  # TODO(synk): bidirectional
    H = hidden_size
    Hp = _round_up(H, 128)
    Hd = H * direction
    Hdp = _round_up(Hd, 128)

    w_proj = params["w_proj"]                      # (Hd, F)
    F = w_proj.shape[1]
    wp_t = jnp.zeros((F, Hdp), jnp.float32).at[:, :Hd].set(w_proj.T)
    bp = jnp.zeros((1, Hdp), jnp.float32).at[0, :Hd].set(params["b_proj"])

    # gate-blocked padding so r/z/n live at lane-aligned [0:Hp], [Hp:2Hp], [2Hp:3Hp]
    w_ih = params["w_ih"].reshape(3, H, Hd)        # (3, H, Hd)
    wih_full = jnp.zeros((3, Hp, Hdp), jnp.float32).at[:, :H, :Hd].set(w_ih)
    wih_t = jnp.transpose(wih_full, (2, 0, 1)).reshape(Hdp, 3 * Hp)
    bih = jnp.zeros((3, Hp), jnp.float32).at[:, :H].set(
        params["b_ih"].reshape(3, H)).reshape(1, 3 * Hp)

    w_hh = params["w_hh"].reshape(3, H, H)
    whh_full = jnp.zeros((3, Hp, Hp), jnp.float32).at[:, :H, :H].set(w_hh)
    whh_t = jnp.transpose(whh_full, (2, 0, 1)).reshape(Hp, 3 * Hp)
    bhh = jnp.zeros((3, Hp), jnp.float32).at[:, :H].set(
        params["b_hh"].reshape(3, H)).reshape(1, 3 * Hp)

    return {
        "wp_t": wp_t.astype(jnp.bfloat16),   # bf16 for the MXU
        "bp": bp,
        "wih_t": wih_t.astype(jnp.bfloat16),
        "bih": bih,
        "whh_t": whh_t,                      # tiny recurrent matmul stays f32
        "bhh": bhh,
    }


# ----------------------------------------------------------------------------
# Module forward
# ----------------------------------------------------------------------------
def relu_rnn_encoder_forward(inputs, h, c, prep, *, num_layers):
    """inputs: (B, T, F), h/c: (direction=1, B, H).  Matches PyTorch forward():
       output = proj(inputs); repeat num_layers x: output, h = GRU(ReLU(output), h)."""
    B, T, F = inputs.shape
    H = h.shape[-1]
    Hp = prep["whh_t"].shape[0]
    G3 = prep["whh_t"].shape[1]
    Bp = _round_up(B, 8)

    # single transpose in: time-major, batch padded to sublane multiple
    x_tm = jnp.transpose(inputs, (1, 0, 2))                  # (T, B, F)
    if Bp != B:
        x_tm = jnp.pad(x_tm, ((0, 0), (0, Bp - B), (0, 0)))
    h0p = jnp.pad(h[0], ((0, Bp - B), (0, Hp - H)))          # (Bp, Hp)

    M = T * Bp
    # layer 0: projection + ReLU + input-gate matmul fused, all T steps at once
    gi = proj_gi_pallas(x_tm.reshape(M, F), prep["wp_t"], prep["bp"],
                        prep["wih_t"], prep["bih"]).reshape(T, Bp, G3)

    h_cur = h0p
    act = None
    for layer in range(num_layers):
        if layer > 0:
            # input-gate matmul hoisted out of the recurrence for this layer too
            gi = relu_gi_pallas(act.reshape(M, Hp), prep["wih_t"],
                                prep["bih"]).reshape(T, Bp, G3)
        act, h_cur = gru_pallas(gi, h_cur, prep["whh_t"], prep["bhh"])
    # dropout in nn.GRU(num_layers=1) is a no-op.

    # single transpose out + unpad
    out = jnp.transpose(act[:, :B, :H], (1, 0, 2))           # (B, T, H)
    h_n = h_cur[:B, :H][None, :, :]
    return out, h_n, c


# ----------------------------------------------------------------------------
# Pure-JAX reference (f32) for correctness check
# ----------------------------------------------------------------------------
def _gru_ref(x, h0, w_ih, w_hh, b_ih, b_hh):
    H = h0.shape[-1]

    def step(hh, x_t):
        gi = x_t @ w_ih.T + b_ih
        gh = hh @ w_hh.T + b_hh
        r = jax.nn.sigmoid(gi[:, :H] + gh[:, :H])
        z = jax.nn.sigmoid(gi[:, H:2 * H] + gh[:, H:2 * H])
        n = jnp.tanh(gi[:, 2 * H:] + r * gh[:, 2 * H:])
        h_new = (1.0 - z) * n + z * hh
        return h_new, h_new

    h_n, outs = jax.lax.scan(step, h0, jnp.transpose(x, (1, 0, 2)))
    return jnp.transpose(outs, (1, 0, 2)), h_n


def _forward_ref(inputs, h, c, params, num_layers):
    output = inputs @ params["w_proj"].T + params["b_proj"]
    h_cur = h[0]
    for _ in range(num_layers):
        output = jnp.maximum(output, 0.0)
        output, h_cur = _gru_ref(output, h_cur, params["w_ih"], params["w_hh"],
                                 params["b_ih"], params["b_hh"])
    return output, h_cur[None], c


# ----------------------------------------------------------------------------
if __name__ == "__main__":
    B, T = 4, 8
    feature_size, hidden_size = 16, 32
    num_layers, direction = 2, 1
    Hd = hidden_size * direction

    key = jax.random.PRNGKey(0)
    k = jax.random.split(key, 8)
    s_proj = 1.0 / jnp.sqrt(feature_size)
    s_gru = 1.0 / jnp.sqrt(hidden_size)
    params = {
        "w_proj": jax.random.uniform(k[0], (Hd, feature_size), jnp.float32, -s_proj, s_proj),
        "b_proj": jax.random.uniform(k[1], (Hd,), jnp.float32, -s_proj, s_proj),
        "w_ih":   jax.random.uniform(k[2], (3 * hidden_size, Hd), jnp.float32, -s_gru, s_gru),
        "w_hh":   jax.random.uniform(k[3], (3 * hidden_size, hidden_size), jnp.float32, -s_gru, s_gru),
        "b_ih":   jax.random.uniform(k[4], (3 * hidden_size,), jnp.float32, -s_gru, s_gru),
        "b_hh":   jax.random.uniform(k[5], (3 * hidden_size,), jnp.float32, -s_gru, s_gru),
    }

    x = jax.random.normal(k[6], (B, T, feature_size), jnp.float32)
    h0 = jnp.zeros((direction, B, hidden_size), jnp.float32)
    c0 = jnp.zeros((direction, B, hidden_size), jnp.float32)

    prep = prepare_params(params, hidden_size, direction)

    fwd = jax.jit(functools.partial(relu_rnn_encoder_forward, num_layers=num_layers))
    out, h_n, c_out = fwd(x, h0, c0, prep)
    jax.block_until_ready(out)

    ref_out, ref_h, _ = _forward_ref(x, h0, c0, params, num_layers)
    assert out.shape == (B, T, hidden_size)
    assert h_n.shape == (direction, B, hidden_size)
    # bf16 matmul inputs (f32 accumulation / f32 carry) -> slightly looser tolerance
    assert jnp.allclose(out, ref_out, atol=2e-2, rtol=2e-2)
    assert jnp.allclose(h_n, ref_h, atol=2e-2, rtol=2e-2)

    print("KERNEL_OK")
</pallas_src>

<mosaic_0001>
module attributes {stable_mosaic.version = 11 : i64} {
  func.func @_proj_gi_kernel(%arg0: i32, %arg1: memref<64x16xf32, #tpu.memory_space<vmem>>, %arg2: memref<16x128xbf16, #tpu.memory_space<vmem>>, %arg3: memref<1x128xf32, #tpu.memory_space<vmem>>, %arg4: memref<128x384xbf16, #tpu.memory_space<vmem>>, %arg5: memref<1x384xf32, #tpu.memory_space<vmem>>, %arg6: memref<64x384xf32, #tpu.memory_space<vmem>>) attributes {dimension_semantics = [#tpu.dimension_semantics<parallel>], iteration_bounds = array<i64: 1>, scalar_prefetch = 0 : i64, scratch_operands = 0 : i64, tpu.core_type = #tpu.core_type<tc>, window_params = [{transform_indices = @transform_0, window_bounds = array<i64: 64, 16>}, {pipeline_mode = #tpu.pipeline_mode<synchronous>, transform_indices = @transform_1, window_bounds = array<i64: 16, 128>}, {pipeline_mode = #tpu.pipeline_mode<synchronous>, transform_indices = @transform_2, window_bounds = array<i64: 1, 128>}, {pipeline_mode = #tpu.pipeline_mode<synchronous>, transform_indices = @transform_3, window_bounds = array<i64: 128, 384>}, {pipeline_mode = #tpu.pipeline_mode<synchronous>, transform_indices = @transform_4, window_bounds = array<i64: 1, 384>}, {transform_indices = @transform_5, window_bounds = array<i64: 64, 384>}]} {
    %c0 = arith.constant 0 : index
    %c0_0 = arith.constant 0 : index
    %0 = vector.load %arg1[%c0, %c0_0] : memref<64x16xf32, #tpu.memory_space<vmem>>, vector<64x16xf32>
    %1 = arith.truncf %0 : vector<64x16xf32> to vector<64x16xbf16>
    %c0_1 = arith.constant 0 : index
    %c0_2 = arith.constant 0 : index
    %2 = vector.load %arg2[%c0_1, %c0_2] : memref<16x128xbf16, #tpu.memory_space<vmem>>, vector<16x128xbf16>
    %cst = arith.constant dense<0.000000e+00> : vector<64x128xf32>
    %3 = tpu.matmul %1, %2, %cst {dimension_numbers = #tpu.dot_dimension_numbers<[1], [0], [0], [1], [0, 0, 1, 1], [], []>} : vector<64x16xbf16>, vector<16x128xbf16>, vector<64x128xf32> -> vector<64x128xf32>
    %c0_3 = arith.constant 0 : index
    %c0_4 = arith.constant 0 : index
    %4 = vector.load %arg3[%c0_3, %c0_4] : memref<1x128xf32, #tpu.memory_space<vmem>>, vector<1x128xf32>
    %5 = vector.broadcast %4 : vector<1x128xf32> to vector<64x128xf32>
    %6 = arith.addf %3, %5 : vector<64x128xf32>
    %cst_5 = arith.constant 0.000000e+00 : f32
    %7 = vector.broadcast %cst_5 : f32 to vector<64x128xf32>
    %8 = arith.maximumf %6, %7 : vector<64x128xf32>
    %9 = arith.truncf %8 : vector<64x128xf32> to vector<64x128xbf16>
    %c0_6 = arith.constant 0 : index
    %c0_7 = arith.constant 0 : index
    %10 = vector.load %arg4[%c0_6, %c0_7] : memref<128x384xbf16, #tpu.memory_space<vmem>>, vector<128x384xbf16>
    %cst_8 = arith.constant dense<0.000000e+00> : vector<64x384xf32>
    %11 = tpu.matmul %9, %10, %cst_8 {dimension_numbers = #tpu.dot_dimension_numbers<[1], [0], [0], [1], [0, 0, 1, 1], [], []>} : vector<64x128xbf16>, vector<128x384xbf16>, vector<64x384xf32> -> vector<64x384xf32>
    %c0_9 = arith.constant 0 : index
    %c0_10 = arith.constant 0 : index
    %12 = vector.load %arg5[%c0_9, %c0_10] : memref<1x384xf32, #tpu.memory_space<vmem>>, vector<1x384xf32>
    %13 = vector.broadcast %12 : vector<1x384xf32> to vector<64x384xf32>
    %14 = arith.addf %11, %13 : vector<64x384xf32>
    %c0_11 = arith.constant 0 : index
    %c0_12 = arith.constant 0 : index
    %15 = vector.load %arg6[%c0_11, %c0_12] : memref<64x384xf32, #tpu.memory_space<vmem>>, vector<64x384xf32>
    tpu.vector_store %arg6[%c0_11, %c0_12], %14 {strides = array<i32>} : memref<64x384xf32, #tpu.memory_space<vmem>>, vector<64x384xf32>,
    return
  }
  func.func @transform_0(%arg0: i32) -> (i32, i32) {
    %c0_i32 = arith.constant 0 : i32
    %c0_i32_0 = arith.constant 0 : i32
    return %arg0, %c0_i32 : i32, i32
  }
  func.func @transform_1(%arg0: i32) -> (i32, i32) {
    %c0_i32 = arith.constant 0 : i32
    %c0_i32_0 = arith.constant 0 : i32
    %c0_i32_1 = arith.constant 0 : i32
    return %c0_i32, %c0_i32_0 : i32, i32
  }
  func.func @transform_2(%arg0: i32) -> (i32, i32) {
    %c0_i32 = arith.constant 0 : i32
    %c0_i32_0 = arith.constant 0 : i32
    %c0_i32_1 = arith.constant 0 : i32
    return %c0_i32, %c0_i32_0 : i32, i32
  }
  func.func @transform_3(%arg0: i32) -> (i32, i32) {
    %c0_i32 = arith.constant 0 : i32
    %c0_i32_0 = arith.constant 0 : i32
    %c0_i32_1 = arith.constant 0 : i32
    return %c0_i32, %c0_i32_0 : i32, i32
  }
  func.func @transform_4(%arg0: i32) -> (i32, i32) {
    %c0_i32 = arith.constant 0 : i32
    %c0_i32_0 = arith.constant 0 : i32
    %c0_i32_1 = arith.constant 0 : i32
    return %c0_i32, %c0_i32_0 : i32, i32
  }
  func.func @transform_5(%arg0: i32) -> (i32, i32) {
    %c0_i32 = arith.constant 0 : i32
    %c0_i32_0 = arith.constant 0 : i32
    return %arg0, %c0_i32 : i32, i32
  }
}

module attributes {stable_mosaic.version = 11 : i64} {
  func.func @_relu_gi_kernel(%arg0: i32, %arg1: memref<64x128xf32, #tpu.memory_space<vmem>>, %arg2: memref<128x384xbf16, #tpu.memory_space<vmem>>, %arg3: memref<1x384xf32, #tpu.memory_space<vmem>>, %arg4: memref<64x384xf32, #tpu.memory_space<vmem>>) attributes {dimension_semantics = [#tpu.dimension_semantics<parallel>], iteration_bounds = array<i64: 1>, scalar_prefetch = 0 : i64, scratch_operands = 0 : i64, tpu.core_type = #tpu.core_type<tc>, window_params = [{transform_indices = @transform_0, window_bounds = array<i64: 64, 128>}, {pipeline_mode = #tpu.pipeline_mode<synchronous>, transform_indices = @transform_1, window_bounds = array<i64: 128, 384>}, {pipeline_mode = #tpu.pipeline_mode<synchronous>, transform_indices = @transform_2, window_bounds = array<i64: 1, 384>}, {transform_indices = @transform_3, window_bounds = array<i64: 64, 384>}]} {
    %c0 = arith.constant 0 : index
    %c0_0 = arith.constant 0 : index
    %0 = vector.load %arg1[%c0, %c0_0] : memref<64x128xf32, #tpu.memory_space<vmem>>, vector<64x128xf32>
    %cst = arith.constant 0.000000e+00 : f32
    %1 = vector.broadcast %cst : f32 to vector<64x128xf32>
    %2 = arith.maximumf %0, %1 : vector<64x128xf32>
    %3 = arith.truncf %2 : vector<64x128xf32> to vector<64x128xbf16>
    %c0_1 = arith.constant 0 : index
    %c0_2 = arith.constant 0 : index
    %4 = vector.load %arg2[%c0_1, %c0_2] : memref<128x384xbf16, #tpu.memory_space<vmem>>, vector<128x384xbf16>
    %cst_3 = arith.constant dense<0.000000e+00> : vector<64x384xf32>
    %5 = tpu.matmul %3, %4, %cst_3 {dimension_numbers = #tpu.dot_dimension_numbers<[1], [0], [0], [1], [0, 0, 1, 1], [], []>} : vector<64x128xbf16>, vector<128x384xbf16>, vector<64x384xf32> -> vector<64x384xf32>
    %c0_4 = arith.constant 0 : index
    %c0_5 = arith.constant 0 : index
    %6 = vector.load %arg3[%c0_4, %c0_5] : memref<1x384xf32, #tpu.memory_space<vmem>>, vector<1x384xf32>
    %7 = vector.broadcast %6 : vector<1x384xf32> to vector<64x384xf32>
    %8 = arith.addf %5, %7 : vector<64x384xf32>
    %c0_6 = arith.constant 0 : index
    %c0_7 = arith.constant 0 : index
    %9 = vector.load %arg4[%c0_6, %c0_7] : memref<64x384xf32, #tpu.memory_space<vmem>>, vector<64x384xf32>
    tpu.vector_store %arg4[%c0_6, %c0_7], %8 {strides = array<i32>} : memref<64x384xf32, #tpu.memory_space<vmem>>, vector<64x384xf32>,
    return
  }
  func.func @transform_0(%arg0: i32) -> (i32, i32) {
    %c0_i32 = arith.constant 0 : i32
    %c0_i32_0 = arith.constant 0 : i32
    return %arg0, %c0_i32 : i32, i32
  }
  func.func @transform_1(%arg0: i32) -> (i32, i32) {
    %c0_i32 = arith.constant 0 : i32
    %c0_i32_0 = arith.constant 0 : i32
    %c0_i32_1 = arith.constant 0 : i32
    return %c0_i32, %c0_i32_0 : i32, i32
  }
  func.func @transform_2(%arg0: i32) -> (i32, i32) {
    %c0_i32 = arith.constant 0 : i32
    %c0_i32_0 = arith.constant 0 : i32
    %c0_i32_1 = arith.constant 0 : i32
    return %c0_i32, %c0_i32_0 : i32, i32
  }
  func.func @transform_3(%arg0: i32) -> (i32, i32) {
    %c0_i32 = arith.constant 0 : i32
    %c0_i32_0 = arith.constant 0 : i32
    return %arg0, %c0_i32 : i32, i32
  }
}

module attributes {stable_mosaic.version = 11 : i64} {
  func.func @_gru_kernel(%arg0: i32, %arg1: memref<8x8x384xf32, #tpu.memory_space<vmem>>, %arg2: memref<8x128xf32, #tpu.memory_space<vmem>>, %arg3: memref<128x384xf32, #tpu.memory_space<vmem>>, %arg4: memref<1x384xf32, #tpu.memory_space<vmem>>, %arg5: memref<8x8x128xf32, #tpu.memory_space<vmem>>, %arg6: memref<8x128xf32, #tpu.memory_space<vmem>>) attributes {dimension_semantics = [#tpu.dimension_semantics<arbitrary>], iteration_bounds = array<i64: 1>, scalar_prefetch = 0 : i64, scratch_operands = 0 : i64, tpu.core_type = #tpu.core_type<tc>, window_params = [{transform_indices = @transform_0, window_bounds = array<i64: 8, 8, 384>}, {pipeline_mode = #tpu.pipeline_mode<synchronous>, transform_indices = @transform_1, window_bounds = array<i64: 8, 128>}, {pipeline_mode = #tpu.pipeline_mode<synchronous>, transform_indices = @transform_2, window_bounds = array<i64: 128, 384>}, {pipeline_mode = #tpu.pipeline_mode<synchronous>, transform_indices = @transform_3, window_bounds = array<i64: 1, 384>}, {transform_indices = @transform_4, window_bounds = array<i64: 8, 8, 128>}, {pipeline_mode = #tpu.pipeline_mode<synchronous>, transform_indices = @transform_5, window_bounds = array<i64: 8, 128>}]} {
    %c0_i32 = arith.constant 0 : i32
    %0 = arith.cmpi eq, %arg0, %c0_i32 : i32
    %1 = arith.extui %0 : i1 to i32
    %c0_i32_0 = arith.constant 0 : i32
    %2 = arith.cmpi ne, %1, %c0_i32_0 : i32
    scf.if %2 {
      %c0_72 = arith.constant 0 : index
      %c0_73 = arith.constant 0 : index
      %295 = vector.load %arg2[%c0_72, %c0_73] : memref<8x128xf32, #tpu.memory_space<vmem>>, vector<8x128xf32>
      %c0_74 = arith.constant 0 : index
      %c0_75 = arith.constant 0 : index
      %296 = vector.load %arg6[%c0_74, %c0_75] : memref<8x128xf32, #tpu.memory_space<vmem>>, vector<8x128xf32>
      tpu.vector_store %arg6[%c0_74, %c0_75], %295 {strides = array<i32>} : memref<8x128xf32, #tpu.memory_space<vmem>>, vector<8x128xf32>,
    } else {
    }
    %c0 = arith.constant 0 : index
    %c0_1 = arith.constant 0 : index
    %3 = vector.load %arg3[%c0, %c0_1] : memref<128x384xf32, #tpu.memory_space<vmem>>, vector<128x384xf32>
    %c0_2 = arith.constant 0 : index
    %c0_3 = arith.constant 0 : index
    %4 = vector.load %arg4[%c0_2, %c0_3] : memref<1x384xf32, #tpu.memory_space<vmem>>, vector<1x384xf32>
    %c0_4 = arith.constant 0 : index
    %c0_5 = arith.constant 0 : index
    %5 = vector.load %arg6[%c0_4, %c0_5] : memref<8x128xf32, #tpu.memory_space<vmem>>, vector<8x128xf32>
    %c0_i32_6 = arith.constant 0 : i32
    %cst = arith.constant dense<0.000000e+00> : vector<8x384xf32>
    %6 = tpu.matmul %5, %3, %cst {dimension_numbers = #tpu.dot_dimension_numbers<[1], [0], [0], [1], [0, 0, 1, 1], [], []>} : vector<8x128xf32>, vector<128x384xf32>, vector<8x384xf32> -> vector<8x384xf32>
    %7 = vector.broadcast %4 : vector<1x384xf32> to vector<8x384xf32>
    %8 = arith.addf %6, %7 : vector<8x384xf32>
    %9 = arith.index_cast %c0_i32_6 : i32 to index
    %c0_7 = arith.constant 0 : index
    %c0_8 = arith.constant 0 : index
    %10 = vector.load %arg1[%9, %c0_7, %c0_8] : memref<8x8x384xf32, #tpu.memory_space<vmem>>, vector<1x8x384xf32>
    %11 = vector.shape_cast %10 : vector<1x8x384xf32> to vector<8x384xf32>
    %12 = vector.extract_strided_slice %11 {offsets = [0, 0], sizes = [8, 128], strides = [1, 1]} : vector<8x384xf32> to vector<8x128xf32>
    %13 = vector.extract_strided_slice %8 {offsets = [0, 0], sizes = [8, 128], strides = [1, 1]} : vector<8x384xf32> to vector<8x128xf32>
    %14 = arith.addf %12, %13 : vector<8x128xf32>
    %15 = arith.negf %14 : vector<8x128xf32>
    %16 = math.exp %15 : vector<8x128xf32>
    %cst_9 = arith.constant 1.000000e+00 : f32
    %17 = vector.broadcast %cst_9 : f32 to vector<8x128xf32>
    %18 = arith.addf %17, %16 : vector<8x128xf32>
    %19 = arith.divf %17, %18 : vector<8x128xf32>
    %20 = vector.extract_strided_slice %11 {offsets = [0, 128], sizes = [8, 128], strides = [1, 1]} : vector<8x384xf32> to vector<8x128xf32>
    %21 = vector.extract_strided_slice %8 {offsets = [0, 128], sizes = [8, 128], strides = [1, 1]} : vector<8x384xf32> to vector<8x128xf32>
    %22 = arith.addf %20, %21 : vector<8x128xf32>
    %23 = arith.negf %22 : vector<8x128xf32>
    %24 = math.exp %23 : vector<8x128xf32>
    %cst_10 = arith.constant 1.000000e+00 : f32
    %25 = vector.broadcast %cst_10 : f32 to vector<8x128xf32>
    %26 = arith.addf %25, %24 : vector<8x128xf32>
    %27 = arith.divf %25, %26 : vector<8x128xf32>
    %28 = vector.extract_strided_slice %11 {offsets = [0, 256], sizes = [8, 128], strides = [1, 1]} : vector<8x384xf32> to vector<8x128xf32>
    %29 = vector.extract_strided_slice %8 {offsets = [0, 256], sizes = [8, 128], strides = [1, 1]} : vector<8x384xf32> to vector<8x128xf32>
    %30 = arith.mulf %19, %29 : vector<8x128xf32>
    %31 = arith.addf %28, %30 : vector<8x128xf32>
    %32 = math.tanh %31 : vector<8x128xf32>
    %cst_11 = arith.constant 1.000000e+00 : f32
    %33 = vector.broadcast %cst_11 : f32 to vector<8x128xf32>
    %34 = arith.subf %33, %27 : vector<8x128xf32>
    %35 = arith.mulf %34, %32 : vector<8x128xf32>
    %36 = arith.mulf %27, %5 : vector<8x128xf32>
    %37 = arith.addf %35, %36 : vector<8x128xf32>
    %38 = arith.index_cast %c0_i32_6 : i32 to index
    %c0_12 = arith.constant 0 : index
    %c0_13 = arith.constant 0 : index
    %39 = vector.load %arg5[%38, %c0_12, %c0_13] : memref<8x8x128xf32, #tpu.memory_space<vmem>>, vector<1x8x128xf32>
    %40 = vector.shape_cast %39 : vector<1x8x128xf32> to vector<8x128xf32>
    %41 = vector.shape_cast %37 : vector<8x128xf32> to vector<1x8x128xf32>
    tpu.vector_store %arg5[%38, %c0_12, %c0_13], %41 {strides = array<i32>} : memref<8x8x128xf32, #tpu.memory_space<vmem>>, vector<1x8x128xf32>,
    %c1_i32 = arith.constant 1 : i32
    %cst_14 = arith.constant dense<0.000000e+00> : vector<8x384xf32>
    %42 = tpu.matmul %37, %3, %cst_14 {dimension_numbers = #tpu.dot_dimension_numbers<[1], [0], [0], [1], [0, 0, 1, 1], [], []>} : vector<8x128xf32>, vector<128x384xf32>, vector<8x384xf32> -> vector<8x384xf32>
    %43 = vector.broadcast %4 : vector<1x384xf32> to vector<8x384xf32>
    %44 = arith.addf %42, %43 : vector<8x384xf32>
    %45 = arith.index_cast %c1_i32 : i32 to index
    %c0_15 = arith.constant 0 : index
    %c0_16 = arith.constant 0 : index
    %46 = vector.load %arg1[%45, %c0_15, %c0_16] : memref<8x8x384xf32, #tpu.memory_space<vmem>>, vector<1x8x384xf32>
    %47 = vector.shape_cast %46 : vector<1x8x384xf32> to vector<8x384xf32>
    %48 = vector.extract_strided_slice %47 {offsets = [0, 0], sizes = [8, 128], strides = [1, 1]} : vector<8x384xf32> to vector<8x128xf32>
    %49 = vector.extract_strided_slice %44 {offsets = [0, 0], sizes = [8, 128], strides = [1, 1]} : vector<8x384xf32> to vector<8x128xf32>
    %50 = arith.addf %48, %49 : vector<8x128xf32>
    %51 = arith.negf %50 : vector<8x128xf32>
    %52 = math.exp %51 : vector<8x128xf32>
    %cst_17 = arith.constant 1.000000e+00 : f32
    %53 = vector.broadcast %cst_17 : f32 to vector<8x128xf32>
    %54 = arith.addf %53, %52 : vector<8x128xf32>
    %55 = arith.divf %53, %54 : vector<8x128xf32>
    %56 = vector.extract_strided_slice %47 {offsets = [0, 128], sizes = [8, 128], strides = [1, 1]} : vector<8x384xf32> to vector<8x128xf32>
    %57 = vector.extract_strided_slice %44 {offsets = [0, 128], sizes = [8, 128], strides = [1, 1]} : vector<8x384xf32> to vector<8x128xf32>
    %58 = arith.addf %56, %57 : vector<8x128xf32>
    %59 = arith.negf %58 : vector<8x128xf32>
    %60 = math.exp %59 : vector<8x128xf32>
    %cst_18 = arith.constant 1.000000e+00 : f32
    %61 = vector.broadcast %cst_18 : f32 to vector<8x128xf32>
    %62 = arith.addf %61, %60 : vector<8x128xf32>
    %63 = arith.divf %61, %62 : vector<8x128xf32>
    %64 = vector.extract_strided_slice %47 {offsets = [0, 256], sizes = [8, 128], strides = [1, 1]} : vector<8x384xf32> to vector<8x128xf32>
    %65 = vector.extract_strided_slice %44 {offsets = [0, 256], sizes = [8, 128], strides = [1, 1]} : vector<8x384xf32> to vector<8x128xf32>
    %66 = arith.mulf %55, %65 : vector<8x128xf32>
    %67 = arith.addf %64, %66 : vector<8x128xf32>
    %68 = math.tanh %67 : vector<8x128xf32>
    %cst_19 = arith.constant 1.000000e+00 : f32
    %69 = vector.broadcast %cst_19 : f32 to vector<8x128xf32>
    %70 = arith.subf %69, %63 : vector<8x128xf32>
    %71 = arith.mulf %70, %68 : vector<8x128xf32>
    %72 = arith.mulf %63, %37 : vector<8x128xf32>
    %73 = arith.addf %71, %72 : vector<8x128xf32>
    %74 = arith.index_cast %c1_i32 : i32 to index
    %c0_20 = arith.constant 0 : index
    %c0_21 = arith.constant 0 : index
    %75 = vector.load %arg5[%74, %c0_20, %c0_21] : memref<8x8x128xf32, #tpu.memory_space<vmem>>, vector<1x8x128xf32>
    %76 = vector.shape_cast %75 : vector<1x8x128xf32> to vector<8x128xf32>
    %77 = vector.shape_cast %73 : vector<8x128xf32> to vector<1x8x128xf32>
    tpu.vector_store %arg5[%74, %c0_20, %c0_21], %77 {strides = array<i32>} : memref<8x8x128xf32, #tpu.memory_space<vmem>>, vector<1x8x128xf32>,
    %c2_i32 = arith.constant 2 : i32
    %cst_22 = arith.constant dense<0.000000e+00> : vector<8x384xf32>
    %78 = tpu.matmul %73, %3, %cst_22 {dimension_numbers = #tpu.dot_dimension_numbers<[1], [0], [0], [1], [0, 0, 1, 1], [], []>} : vector<8x128xf32>, vector<128x384xf32>, vector<8x384xf32> -> vector<8x384xf32>
    %79 = vector.broadcast %4 : vector<1x384xf32> to vector<8x384xf32>
    %80 = arith.addf %78, %79 : vector<8x384xf32>
    %81 = arith.index_cast %c2_i32 : i32 to index
    %c0_23 = arith.constant 0 : index
    %c0_24 = arith.constant 0 : index
    %82 = vector.load %arg1[%81, %c0_23, %c0_24] : memref<8x8x384xf32, #tpu.memory_space<vmem>>, vector<1x8x384xf32>
    %83 = vector.shape_cast %82 : vector<1x8x384xf32> to vector<8x384xf32>
    %84 = vector.extract_strided_slice %83 {offsets = [0, 0], sizes = [8, 128], strides = [1, 1]} : vector<8x384xf32> to vector<8x128xf32>
    %85 = vector.extract_strided_slice %80 {offsets = [0, 0], sizes = [8, 128], strides = [1, 1]} : vector<8x384xf32> to vector<8x128xf32>
    %86 = arith.addf %84, %85 : vector<8x128xf32>
    %87 = arith.negf %86 : vector<8x128xf32>
    %88 = math.exp %87 : vector<8x128xf32>
    %cst_25 = arith.constant 1.000000e+00 : f32
    %89 = vector.broadcast %cst_25 : f32 to vector<8x128xf32>
    %90 = arith.addf %89, %88 : vector<8x128xf32>
    %91 = arith.divf %89, %90 : vector<8x128xf32>
    %92 = vector.extract_strided_slice %83 {offsets = [0, 128], sizes = [8, 128], strides = [1, 1]} : vector<8x384xf32> to vector<8x128xf32>
    %93 = vector.extract_strided_slice %80 {offsets = [0, 128], sizes = [8, 128], strides = [1, 1]} : vector<8x384xf32> to vector<8x128xf32>
    %94 = arith.addf %92, %93 : vector<8x128xf32>
    %95 = arith.negf %94 : vector<8x128xf32>
    %96 = math.exp %95 : vector<8x128xf32>
    %cst_26 = arith.constant 1.000000e+00 : f32
    %97 = vector.broadcast %cst_26 : f32 to vector<8x128xf32>
    %98 = arith.addf %97, %96 : vector<8x128xf32>
    %99 = arith.divf %97, %98 : vector<8x128xf32>
    %100 = vector.extract_strided_slice %83 {offsets = [0, 256], sizes = [8, 128], strides = [1, 1]} : vector<8x384xf32> to vector<8x128xf32>
    %101 = vector.extract_strided_slice %80 {offsets = [0, 256], sizes = [8, 128], strides = [1, 1]} : vector<8x384xf32> to vector<8x128xf32>
    %102 = arith.mulf %91, %101 : vector<8x128xf32>
    %103 = arith.addf %100, %102 : vector<8x128xf32>
    %104 = math.tanh %103 : vector<8x128xf32>
    %cst_27 = arith.constant 1.000000e+00 : f32
    %105 = vector.broadcast %cst_27 : f32 to vector<8x128xf32>
    %106 = arith.subf %105, %99 : vector<8x128xf32>
    %107 = arith.mulf %106, %104 : vector<8x128xf32>
    %108 = arith.mulf %99, %73 : vector<8x128xf32>
    %109 = arith.addf %107, %108 : vector<8x128xf32>
    %110 = arith.index_cast %c2_i32 : i32 to index
    %c0_28 = arith.constant 0 : index
    %c0_29 = arith.constant 0 : index
    %111 = vector.load %arg5[%110, %c0_28, %c0_29] : memref<8x8x128xf32, #tpu.memory_space<vmem>>, vector<1x8x128xf32>
    %112 = vector.shape_cast %111 : vector<1x8x128xf32> to vector<8x128xf32>
    %113 = vector.shape_cast %109 : vector<8x128xf32> to vector<1x8x128xf32>
    tpu.vector_store %arg5[%110, %c0_28, %c0_29], %113 {strides = array<i32>} : memref<8x8x128xf32, #tpu.memory_space<vmem>>, vector<1x8x128xf32>,
    %c3_i32 = arith.constant 3 : i32
    %cst_30 = arith.constant dense<0.000000e+00> : vector<8x384xf32>
    %114 = tpu.matmul %109, %3, %cst_30 {dimension_numbers = #tpu.dot_dimension_numbers<[1], [0], [0], [1], [0, 0, 1, 1], [], []>} : vector<8x128xf32>, vector<128x384xf32>, vector<8x384xf32> -> vector<8x384xf32>
    %115 = vector.broadcast %4 : vector<1x384xf32> to vector<8x384xf32>
    %116 = arith.addf %114, %115 : vector<8x384xf32>
    %117 = arith.index_cast %c3_i32 : i32 to index
    %c0_31 = arith.constant 0 : index
    %c0_32 = arith.constant 0 : index
    %118 = vector.load %arg1[%117, %c0_31, %c0_32] : memref<8x8x384xf32, #tpu.memory_space<vmem>>, vector<1x8x384xf32>
    %119 = vector.shape_cast %118 : vector<1x8x384xf32> to vector<8x384xf32>
    %120 = vector.extract_strided_slice %119 {offsets = [0, 0], sizes = [8, 128], strides = [1, 1]} : vector<8x384xf32> to vector<8x128xf32>
    %121 = vector.extract_strided_slice %116 {offsets = [0, 0], sizes = [8, 128], strides = [1, 1]} : vector<8x384xf32> to vector<8x128xf32>
    %122 = arith.addf %120, %121 : vector<8x128xf32>
    %123 = arith.negf %122 : vector<8x128xf32>
    %124 = math.exp %123 : vector<8x128xf32>
    %cst_33 = arith.constant 1.000000e+00 : f32
    %125 = vector.broadcast %cst_33 : f32 to vector<8x128xf32>
    %126 = arith.addf %125, %124 : vector<8x128xf32>
    %127 = arith.divf %125, %126 : vector<8x128xf32>
    %128 = vector.extract_strided_slice %119 {offsets = [0, 128], sizes = [8, 128], strides = [1, 1]} : vector<8x384xf32> to vector<8x128xf32>
    %129 = vector.extract_strided_slice %116 {offsets = [0, 128], sizes = [8, 128], strides = [1, 1]} : vector<8x384xf32> to vector<8x128xf32>
    %130 = arith.addf %128, %129 : vector<8x128xf32>
    %131 = arith.negf %130 : vector<8x128xf32>
    %132 = math.exp %131 : vector<8x128xf32>
    %cst_34 = arith.constant 1.000000e+00 : f32
    %133 = vector.broadcast %cst_34 : f32 to vector<8x128xf32>
    %134 = arith.addf %133, %132 : vector<8x128xf32>
    %135 = arith.divf %133, %134 : vector<8x128xf32>
    %136 = vector.extract_strided_slice %119 {offsets = [0, 256], sizes = [8, 128], strides = [1, 1]} : vector<8x384xf32> to vector<8x128xf32>
    %137 = vector.extract_strided_slice %116 {offsets = [0, 256], sizes = [8, 128], strides = [1, 1]} : vector<8x384xf32> to vector<8x128xf32>
    %138 = arith.mulf %127, %137 : vector<8x128xf32>
    %139 = arith.addf %136, %138 : vector<8x128xf32>
    %140 = math.tanh %139 : vector<8x128xf32>
    %cst_35 = arith.constant 1.000000e+00 : f32
    %141 = vector.broadcast %cst_35 : f32 to vector<8x128xf32>
    %142 = arith.subf %141, %135 : vector<8x128xf32>
    %143 = arith.mulf %142, %140 : vector<8x128xf32>
    %144 = arith.mulf %135, %109 : vector<8x128xf32>
    %145 = arith.addf %143, %144 : vector<8x128xf32>
    %146 = arith.index_cast %c3_i32 : i32 to index
    %c0_36 = arith.constant 0 : index
    %c0_37 = arith.constant 0 : index
    %147 = vector.load %arg5[%146, %c0_36, %c0_37] : memref<8x8x128xf32, #tpu.memory_space<vmem>>, vector<1x8x128xf32>
    %148 = vector.shape_cast %147 : vector<1x8x128xf32> to vector<8x128xf32>
    %149 = vector.shape_cast %145 : vector<8x128xf32> to vector<1x8x128xf32>
    tpu.vector_store %arg5[%146, %c0_36, %c0_37], %149 {strides = array<i32>} : memref<8x8x128xf32, #tpu.memory_space<vmem>>, vector<1x8x128xf32>,
    %c4_i32 = arith.constant 4 : i32
    %cst_38 = arith.constant dense<0.000000e+00> : vector<8x384xf32>
    %150 = tpu.matmul %145, %3, %cst_38 {dimension_numbers = #tpu.dot_dimension_numbers<[1], [0], [0], [1], [0, 0, 1, 1], [], []>} : vector<8x128xf32>, vector<128x384xf32>, vector<8x384xf32> -> vector<8x384xf32>
    %151 = vector.broadcast %4 : vector<1x384xf32> to vector<8x384xf32>
    %152 = arith.addf %150, %151 : vector<8x384xf32>
    %153 = arith.index_cast %c4_i32 : i32 to index
    %c0_39 = arith.constant 0 : index
    %c0_40 = arith.constant 0 : index
    %154 = vector.load %arg1[%153, %c0_39, %c0_40] : memref<8x8x384xf32, #tpu.memory_space<vmem>>, vector<1x8x384xf32>
    %155 = vector.shape_cast %154 : vector<1x8x384xf32> to vector<8x384xf32>
    %156 = vector.extract_strided_slice %155 {offsets = [0, 0], sizes = [8, 128], strides = [1, 1]} : vector<8x384xf32> to vector<8x128xf32>
    %157 = vector.extract_strided_slice %152 {offsets = [0, 0], sizes = [8, 128], strides = [1, 1]} : vector<8x384xf32> to vector<8x128xf32>
    %158 = arith.addf %156, %157 : vector<8x128xf32>
    %159 = arith.negf %158 : vector<8x128xf32>
    %160 = math.exp %159 : vector<8x128xf32>
    %cst_41 = arith.constant 1.000000e+00 : f32
    %161 = vector.broadcast %cst_41 : f32 to vector<8x128xf32>
    %162 = arith.addf %161, %160 : vector<8x128xf32>
    %163 = arith.divf %161, %162 : vector<8x128xf32>
    %164 = vector.extract_strided_slice %155 {offsets = [0, 128], sizes = [8, 128], strides = [1, 1]} : vector<8x384xf32> to vector<8x128xf32>
    %165 = vector.extract_strided_slice %152 {offsets = [0, 128], sizes = [8, 128], strides = [1, 1]} : vector<8x384xf32> to vector<8x128xf32>
    %166 = arith.addf %164, %165 : vector<8x128xf32>
    %167 = arith.negf %166 : vector<8x128xf32>
    %168 = math.exp %167 : vector<8x128xf32>
    %cst_42 = arith.constant 1.000000e+00 : f32
    %169 = vector.broadcast %cst_42 : f32 to vector<8x128xf32>
    %170 = arith.addf %169, %168 : vector<8x128xf32>
    %171 = arith.divf %169, %170 : vector<8x128xf32>
    %172 = vector.extract_strided_slice %155 {offsets = [0, 256], sizes = [8, 128], strides = [1, 1]} : vector<8x384xf32> to vector<8x128xf32>
    %173 = vector.extract_strided_slice %152 {offsets = [0, 256], sizes = [8, 128], strides = [1, 1]} : vector<8x384xf32> to vector<8x128xf32>
    %174 = arith.mulf %163, %173 : vector<8x128xf32>
    %175 = arith.addf %172, %174 : vector<8x128xf32>
    %176 = math.tanh %175 : vector<8x128xf32>
    %cst_43 = arith.constant 1.000000e+00 : f32
    %177 = vector.broadcast %cst_43 : f32 to vector<8x128xf32>
    %178 = arith.subf %177, %171 : vector<8x128xf32>
    %179 = arith.mulf %178, %176 : vector<8x128xf32>
    %180 = arith.mulf %171, %145 : vector<8x128xf32>
    %181 = arith.addf %179, %180 : vector<8x128xf32>
    %182 = arith.index_cast %c4_i32 : i32 to index
    %c0_44 = arith.constant 0 : index
    %c0_45 = arith.constant 0 : index
    %183 = vector.load %arg5[%182, %c0_44, %c0_45] : memref<8x8x128xf32, #tpu.memory_space<vmem>>, vector<1x8x128xf32>
    %184 = vector.shape_cast %183 : vector<1x8x128xf32> to vector<8x128xf32>
    %185 = vector.shape_cast %181 : vector<8x128xf32> to vector<1x8x128xf32>
    tpu.vector_store %arg5[%182, %c0_44, %c0_45], %185 {strides = array<i32>} : memref<8x8x128xf32, #tpu.memory_space<vmem>>, vector<1x8x128xf32>,
    %c5_i32 = arith.constant 5 : i32
    %cst_46 = arith.constant dense<0.000000e+00> : vector<8x384xf32>
    %186 = tpu.matmul %181, %3, %cst_46 {dimension_numbers = #tpu.dot_dimension_numbers<[1], [0], [0], [1], [0, 0, 1, 1], [], []>} : vector<8x128xf32>, vector<128x384xf32>, vector<8x384xf32> -> vector<8x384xf32>
    %187 = vector.broadcast %4 : vector<1x384xf32> to vector<8x384xf32>
    %188 = arith.addf %186, %187 : vector<8x384xf32>
    %189 = arith.index_cast %c5_i32 : i32 to index
    %c0_47 = arith.constant 0 : index
    %c0_48 = arith.constant 0 : index
    %190 = vector.load %arg1[%189, %c0_47, %c0_48] : memref<8x8x384xf32, #tpu.memory_space<vmem>>, vector<1x8x384xf32>
    %191 = vector.shape_cast %190 : vector<1x8x384xf32> to vector<8x384xf32>
    %192 = vector.extract_strided_slice %191 {offsets = [0, 0], sizes = [8, 128], strides = [1, 1]} : vector<8x384xf32> to vector<8x128xf32>
    %193 = vector.extract_strided_slice %188 {offsets = [0, 0], sizes = [8, 128], strides = [1, 1]} : vector<8x384xf32> to vector<8x128xf32>
    %194 = arith.addf %192, %193 : vector<8x128xf32>
    %195 = arith.negf %194 : vector<8x128xf32>
    %196 = math.exp %195 : vector<8x128xf32>
    %cst_49 = arith.constant 1.000000e+00 : f32
    %197 = vector.broadcast %cst_49 : f32 to vector<8x128xf32>
    %198 = arith.addf %197, %196 : vector<8x128xf32>
    %199 = arith.divf %197, %198 : vector<8x128xf32>
    %200 = vector.extract_strided_slice %191 {offsets = [0, 128], sizes = [8, 128], strides = [1, 1]} : vector<8x384xf32> to vector<8x128xf32>
    %201 = vector.extract_strided_slice %188 {offsets = [0, 128], sizes = [8, 128], strides = [1, 1]} : vector<8x384xf32> to vector<8x128xf32>
    %202 = arith.addf %200, %201 : vector<8x128xf32>
    %203 = arith.negf %202 : vector<8x128xf32>
    %204 = math.exp %203 : vector<8x128xf32>
    %cst_50 = arith.constant 1.000000e+00 : f32
    %205 = vector.broadcast %cst_50 : f32 to vector<8x128xf32>
    %206 = arith.addf %205, %204 : vector<8x128xf32>
    %207 = arith.divf %205, %206 : vector<8x128xf32>
    %208 = vector.extract_strided_slice %191 {offsets = [0, 256], sizes = [8, 128], strides = [1, 1]} : vector<8x384xf32> to vector<8x128xf32>
    %209 = vector.extract_strided_slice %188 {offsets = [0, 256], sizes = [8, 128], strides = [1, 1]} : vector<8x384xf32> to vector<8x128xf32>
    %210 = arith.mulf %199, %209 : vector<8x128xf32>
    %211 = arith.addf %208, %210 : vector<8x128xf32>
    %212 = math.tanh %211 : vector<8x128xf32>
    %cst_51 = arith.constant 1.000000e+00 : f32
    %213 = vector.broadcast %cst_51 : f32 to vector<8x128xf32>
    %214 = arith.subf %213, %207 : vector<8x128xf32>
    %215 = arith.mulf %214, %212 : vector<8x128xf32>
    %216 = arith.mulf %207, %181 : vector<8x128xf32>
    %217 = arith.addf %215, %216 : vector<8x128xf32>
    %218 = arith.index_cast %c5_i32 : i32 to index
    %c0_52 = arith.constant 0 : index
    %c0_53 = arith.constant 0 : index
    %219 = vector.load %arg5[%218, %c0_52, %c0_53] : memref<8x8x128xf32, #tpu.memory_space<vmem>>, vector<1x8x128xf32>
    %220 = vector.shape_cast %219 : vector<1x8x128xf32> to vector<8x128xf32>
    %221 = vector.shape_cast %217 : vector<8x128xf32> to vector<1x8x128xf32>
    tpu.vector_store %arg5[%218, %c0_52, %c0_53], %221 {strides = array<i32>} : memref<8x8x128xf32, #tpu.memory_space<vmem>>, vector<1x8x128xf32>,
    %c6_i32 = arith.constant 6 : i32
    %cst_54 = arith.constant dense<0.000000e+00> : vector<8x384xf32>
    %222 = tpu.matmul %217, %3, %cst_54 {dimension_numbers = #tpu.dot_dimension_numbers<[1], [0], [0], [1], [0, 0, 1, 1], [], []>} : vector<8x128xf32>, vector<128x384xf32>, vector<8x384xf32> -> vector<8x384xf32>
    %223 = vector.broadcast %4 : vector<1x384xf32> to vector<8x384xf32>
    %224 = arith.addf %222, %223 : vector<8x384xf32>
    %225 = arith.index_cast %c6_i32 : i32 to index
    %c0_55 = arith.constant 0 : index
    %c0_56 = arith.constant 0 : index
    %226 = vector.load %arg1[%225, %c0_55, %c0_56] : memref<8x8x384xf32, #tpu.memory_space<vmem>>, vector<1x8x384xf32>
    %227 = vector.shape_cast %226 : vector<1x8x384xf32> to vector<8x384xf32>
    %228 = vector.extract_strided_slice %227 {offsets = [0, 0], sizes = [8, 128], strides = [1, 1]} : vector<8x384xf32> to vector<8x128xf32>
    %229 = vector.extract_strided_slice %224 {offsets = [0, 0], sizes = [8, 128], strides = [1, 1]} : vector<8x384xf32> to vector<8x128xf32>
    %230 = arith.addf %228, %229 : vector<8x128xf32>
    %231 = arith.negf %230 : vector<8x128xf32>
    %232 = math.exp %231 : vector<8x128xf32>
    %cst_57 = arith.constant 1.000000e+00 : f32
    %233 = vector.broadcast %cst_57 : f32 to vector<8x128xf32>
    %234 = arith.addf %233, %232 : vector<8x128xf32>
    %235 = arith.divf %233, %234 : vector<8x128xf32>
    %236 = vector.extract_strided_slice %227 {offsets = [0, 128], sizes = [8, 128], strides = [1, 1]} : vector<8x384xf32> to vector<8x128xf32>
    %237 = vector.extract_strided_slice %224 {offsets = [0, 128], sizes = [8, 128], strides = [1, 1]} : vector<8x384xf32> to vector<8x128xf32>
    %238 = arith.addf %236, %237 : vector<8x128xf32>
    %239 = arith.negf %238 : vector<8x128xf32>
    %240 = math.exp %239 : vector<8x128xf32>
    %cst_58 = arith.constant 1.000000e+00 : f32
    %241 = vector.broadcast %cst_58 : f32 to vector<8x128xf32>
    %242 = arith.addf %241, %240 : vector<8x128xf32>
    %243 = arith.divf %241, %242 : vector<8x128xf32>
    %244 = vector.extract_strided_slice %227 {offsets = [0, 256], sizes = [8, 128], strides = [1, 1]} : vector<8x384xf32> to vector<8x128xf32>
    %245 = vector.extract_strided_slice %224 {offsets = [0, 256], sizes = [8, 128], strides = [1, 1]} : vector<8x384xf32> to vector<8x128xf32>
    %246 = arith.mulf %235, %245 : vector<8x128xf32>
    %247 = arith.addf %244, %246 : vector<8x128xf32>
    %248 = math.tanh %247 : vector<8x128xf32>
    %cst_59 = arith.constant 1.000000e+00 : f32
    %249 = vector.broadcast %cst_59 : f32 to vector<8x128xf32>
    %250 = arith.subf %249, %243 : vector<8x128xf32>
    %251 = arith.mulf %250, %248 : vector<8x128xf32>
    %252 = arith.mulf %243, %217 : vector<8x128xf32>
    %253 = arith.addf %251, %252 : vector<8x128xf32>
    %254 = arith.index_cast %c6_i32 : i32 to index
    %c0_60 = arith.constant 0 : index
    %c0_61 = arith.constant 0 : index
    %255 = vector.load %arg5[%254, %c0_60, %c0_61] : memref<8x8x128xf32, #tpu.memory_space<vmem>>, vector<1x8x128xf32>
    %256 = vector.shape_cast %255 : vector<1x8x128xf32> to vector<8x128xf32>
    %257 = vector.shape_cast %253 : vector<8x128xf32> to vector<1x8x128xf32>
    tpu.vector_store %arg5[%254, %c0_60, %c0_61], %257 {strides = array<i32>} : memref<8x8x128xf32, #tpu.memory_space<vmem>>, vector<1x8x128xf32>,
    %c7_i32 = arith.constant 7 : i32
    %cst_62 = arith.constant dense<0.000000e+00> : vector<8x384xf32>
    %258 = tpu.matmul %253, %3, %cst_62 {dimension_numbers = #tpu.dot_dimension_numbers<[1], [0], [0], [1], [0, 0, 1, 1], [], []>} : vector<8x128xf32>, vector<128x384xf32>, vector<8x384xf32> -> vector<8x384xf32>
    %259 = vector.broadcast %4 : vector<1x384xf32> to vector<8x384xf32>
    %260 = arith.addf %258, %259 : vector<8x384xf32>
    %261 = arith.index_cast %c7_i32 : i32 to index
    %c0_63 = arith.constant 0 : index
    %c0_64 = arith.constant 0 : index
    %262 = vector.load %arg1[%261, %c0_63, %c0_64] : memref<8x8x384xf32, #tpu.memory_space<vmem>>, vector<1x8x384xf32>
    %263 = vector.shape_cast %262 : vector<1x8x384xf32> to vector<8x384xf32>
    %264 = vector.extract_strided_slice %263 {offsets = [0, 0], sizes = [8, 128], strides = [1, 1]} : vector<8x384xf32> to vector<8x128xf32>
    %265 = vector.extract_strided_slice %260 {offsets = [0, 0], sizes = [8, 128], strides = [1, 1]} : vector<8x384xf32> to vector<8x128xf32>
    %266 = arith.addf %264, %265 : vector<8x128xf32>
    %267 = arith.negf %266 : vector<8x128xf32>
    %268 = math.exp %267 : vector<8x128xf32>
    %cst_65 = arith.constant 1.000000e+00 : f32
    %269 = vector.broadcast %cst_65 : f32 to vector<8x128xf32>
    %270 = arith.addf %269, %268 : vector<8x128xf32>
    %271 = arith.divf %269, %270 : vector<8x128xf32>
    %272 = vector.extract_strided_slice %263 {offsets = [0, 128], sizes = [8, 128], strides = [1, 1]} : vector<8x384xf32> to vector<8x128xf32>
    %273 = vector.extract_strided_slice %260 {offsets = [0, 128], sizes = [8, 128], strides = [1, 1]} : vector<8x384xf32> to vector<8x128xf32>
    %274 = arith.addf %272, %273 : vector<8x128xf32>
    %275 = arith.negf %274 : vector<8x128xf32>
    %276 = math.exp %275 : vector<8x128xf32>
    %cst_66 = arith.constant 1.000000e+00 : f32
    %277 = vector.broadcast %cst_66 : f32 to vector<8x128xf32>
    %278 = arith.addf %277, %276 : vector<8x128xf32>
    %279 = arith.divf %277, %278 : vector<8x128xf32>
    %280 = vector.extract_strided_slice %263 {offsets = [0, 256], sizes = [8, 128], strides = [1, 1]} : vector<8x384xf32> to vector<8x128xf32>
    %281 = vector.extract_strided_slice %260 {offsets = [0, 256], sizes = [8, 128], strides = [1, 1]} : vector<8x384xf32> to vector<8x128xf32>
    %282 = arith.mulf %271, %281 : vector<8x128xf32>
    %283 = arith.addf %280, %282 : vector<8x128xf32>
    %284 = math.tanh %283 : vector<8x128xf32>
    %cst_67 = arith.constant 1.000000e+00 : f32
    %285 = vector.broadcast %cst_67 : f32 to vector<8x128xf32>
    %286 = arith.subf %285, %279 : vector<8x128xf32>
    %287 = arith.mulf %286, %284 : vector<8x128xf32>
    %288 = arith.mulf %279, %253 : vector<8x128xf32>
    %289 = arith.addf %287, %288 : vector<8x128xf32>
    %290 = arith.index_cast %c7_i32 : i32 to index
    %c0_68 = arith.constant 0 : index
    %c0_69 = arith.constant 0 : index
    %291 = vector.load %arg5[%290, %c0_68, %c0_69] : memref<8x8x128xf32, #tpu.memory_space<vmem>>, vector<1x8x128xf32>
    %292 = vector.shape_cast %291 : vector<1x8x128xf32> to vector<8x128xf32>
    %293 = vector.shape_cast %289 : vector<8x128xf32> to vector<1x8x128xf32>
    tpu.vector_store %arg5[%290, %c0_68, %c0_69], %293 {strides = array<i32>} : memref<8x8x128xf32, #tpu.memory_space<vmem>>, vector<1x8x128xf32>,
    %c8_i32 = arith.constant 8 : i32
    %c0_70 = arith.constant 0 : index
    %c0_71 = arith.constant 0 : index
    %294 = vector.load %arg6[%c0_70, %c0_71] : memref<8x128xf32, #tpu.memory_space<vmem>>, vector<8x128xf32>
    tpu.vector_store %arg6[%c0_70, %c0_71], %289 {strides = array<i32>} : memref<8x128xf32, #tpu.memory_space<vmem>>, vector<8x128xf32>,
    return
  }
  func.func @transform_0(%arg0: i32) -> (i32, i32, i32) {
    %c0_i32 = arith.constant 0 : i32
    %c0_i32_0 = arith.constant 0 : i32
    %c0_i32_1 = arith.constant 0 : i32
    return %arg0, %c0_i32, %c0_i32_0 : i32, i32, i32
  }
  func.func @transform_1(%arg0: i32) -> (i32, i32) {
    %c0_i32 = arith.constant 0 : i32
    %c0_i32_0 = arith.constant 0 : i32
    %c0_i32_1 = arith.constant 0 : i32
    return %c0_i32, %c0_i32_0 : i32, i32
  }
  func.func @transform_2(%arg0: i32) -> (i32, i32) {
    %c0_i32 = arith.constant 0 : i32
    %c0_i32_0 = arith.constant 0 : i32
    %c0_i32_1 = arith.constant 0 : i32
    return %c0_i32, %c0_i32_0 : i32, i32
  }
  func.func @transform_3(%arg0: i32) -> (i32, i32) {
    %c0_i32 = arith.constant 0 : i32
    %c0_i32_0 = arith.constant 0 : i32
    %c0_i32_1 = arith.constant 0 : i32
    return %c0_i32, %c0_i32_0 : i32, i32
  }
  func.func @transform_4(%arg0: i32) -> (i32, i32, i32) {
    %c0_i32 = arith.constant 0 : i32
    %c0_i32_0 = arith.constant 0 : i32
    %c0_i32_1 = arith.constant 0 : i32
    return %arg0, %c0_i32, %c0_i32_0 : i32, i32, i32
  }
  func.func @transform_5(%arg0: i32) -> (i32, i32) {
    %c0_i32 = arith.constant 0 : i32
    %c0_i32_0 = arith.constant 0 : i32
    %c0_i32_1 = arith.constant 0 : i32
    return %c0_i32, %c0_i32_0 : i32, i32
  }
}

</mosaic_0001>

<bundles_post_ra>
// kernel: relu_rnn_encoder_forward.6
= control target key start
LH: loop header
LB: loop body
LE: loop exit
PB: predicated region body
PF: predicated region fallthrough
CT: control target
= control target key end

     0   :  { %v471_v1 = vmov 0   ;;  %v69_v45 = vlaneseq  ;;  %s687_s1 = inlined_call_operand.vmem [shape: bf16[128,384], index: 1, kind: input, shape index: {}]   ;;  %s688_s0 = inlined_call_operand.vmem [shape: f32[64,128], index: 0, kind: input, shape index: {}]   ;;  %s689_s2 = inlined_call_operand.vmem [shape: f32[1,384], index: 2, kind: input, shape index: {}]   ;;  %s690_s3 = inlined_call_operand.vmem [shape: f32[64,384], index: 3, kind: output, shape index: {}]  }
   0x1   :  { %v439_v0 = vld [vmem:[%s687_s1 + $0x4] ss:$12 sps:$4 sm:$0xff]   ;;  %244 = vmatprep.mubr.bf16.mxu0 %v471_v1  ;;  %v441_v2 = vld [vmem:[%s687_s1] ss:$12 sps:$4 sm:$0xff]   ;;  %v442_v3 = vld [vmem:[%s687_s1 + $0x1c] ss:$12 sps:$4 sm:$0xff]  }
   0x2   :  { %212 = vmatprep.subr.bf16.mxu0 %v439_v0  ;;  %v444_v4 = vld [vmem:[%s687_s1 + $0x18] ss:$12 sps:$4 sm:$0xff]   ;;  %v445_v5 = vld [vmem:[%s687_s1 + $0x34] ss:$12 sps:$4 sm:$0xff]   ;;  %v447_v7 = vld [vmem:[%s687_s1 + $0x30] ss:$12 sps:$4 sm:$0xff]  }
   0x3   :  { %213 = vmatpush1.bf16.msra.mxu0 %v441_v2  ;;  %v451_v6 = vld [vmem:[%s687_s1 + $0x8] ss:$12 sps:$4 sm:$0xff]   ;;  %v448_v8 = vld [vmem:[%s687_s1 + $0x4c] ss:$12 sps:$4 sm:$0xff]   ;;  %v452_v12 = vld [vmem:[%s687_s1 + $0x64] ss:$12 sps:$4 sm:$0xff]  }
   0x4   :  { %214 = vmatprep.subr.bf16.mxu0 %v442_v3  ;;  %414 = vmatprep.subr.bf16.mxu1 %v451_v6  ;;  %v455_v9 = vld [vmem:[%s687_s1 + $0x20] ss:$12 sps:$4 sm:$0xff]   ;;  %v459_v10 = vld [vmem:[%s687_s1 + $0x38] ss:$12 sps:$4 sm:$0xff]   ;;  %v450_v11 = vld [vmem:[%s687_s1 + $0x48] ss:$12 sps:$4 sm:$0xff]  }
   0x5   :  { %415 = vmatpush3.bf16.msra.mxu1 %v451_v6  ;;  %v454_v13 = vld [vmem:[%s687_s1 + $0x60] ss:$12 sps:$4 sm:$0xff]   ;;  %v463_v14 = vld [vmem:[%s687_s1 + $0x50] ss:$12 sps:$4 sm:$0xff]   ;;  %v467_v20 = vld [vmem:[%s687_s1 + $0x68] ss:$12 sps:$4 sm:$0xff]  }
   0x6   :  { %416 = vmatprep.subr.bf16.mxu1 %v455_v9  ;;  %v456_v15 = vld [vmem:[%s687_s1 + $0x7c] ss:$12 sps:$4 sm:$0xff]   ;;  %v15_v16 = vld [vmem:[%s688_s0] sm:$0xff]  ;;  %v464_v26 = vld [vmem:[%s687_s1 + $0xac] ss:$12 sps:$4 sm:$0xff]   ;;  %v70_v46 = vshrl.u32 %v69_v45, 7 }
   0x7   :  { %215 = vmatpush1.bf16.msra.mxu0 %v444_v4  ;;  %v16_v17 = vld [vmem:[%s688_s0 + $0x8] sm:$0xff]  ;;  %v23_v18 = vmax.f32 %v15_v16, 0.0  ;;  %v458_v21 = vld [vmem:[%s687_s1 + $0x78] ss:$12 sps:$4 sm:$0xff]   ;;  %v460_v23 = vld [vmem:[%s687_s1 + $0x94] ss:$12 sps:$4 sm:$0xff]  }
   0x8   :  { %216 = vmatprep.subr.bf16.mxu0 %v445_v5  ;;  %v24_v19 = vmax.f32 %v16_v17, 0.0  ;;  %v468_v24 = vld [vmem:[%s687_s1 + $0x80] ss:$12 sps:$4 sm:$0xff]   ;;  %v462_v25 = vld [vmem:[%s687_s1 + $0x90] ss:$12 sps:$4 sm:$0xff]   ;;  %v71_v47 = vsub.s32 0, %v70_v46 }
   0x9   :  { %417 = vmatpush3.bf16.msra.mxu1 %v455_v9  ;;  %v469_v27 = vld [vmem:[%s687_s1 + $0x98] ss:$12 sps:$4 sm:$0xff]   ;;  %v466_v28 = vld [vmem:[%s687_s1 + $0xa8] ss:$12 sps:$4 sm:$0xff]   ;;  %v470_v29 = vld [vmem:[%s687_s1 + $0xb0] ss:$12 sps:$4 sm:$0xff]  }
   0xa   :  { %418 = vmatprep.subr.bf16.mxu1 %v459_v10  ;;  %v31_v22 = vpack.c.bf16 %v24_v19, %v23_v18  ;;  %v17_v30 = vld [vmem:[%s688_s0 + $0x10] sm:$0xff]  ;;  %v18_v31 = vld [vmem:[%s688_s0 + $0x18] sm:$0xff]  ;;  %v19_v32 = vld [vmem:[%s688_s0 + $0x20] sm:$0xff]  ;;  %v75_v49 = vsub.s32 1, %v70_v46  ;;  %v79_v52 = vsub.s32 2, %v70_v46 }
   0xb   :  { %217 = vmatpush1.bf16.msra.mxu0 %v447_v7  ;;  %v20_v33 = vld [vmem:[%s688_s0 + $0x28] sm:$0xff]  ;;  %v25_v34 = vmax.f32 %v17_v30, 0.0  ;;  %v26_v35 = vmax.f32 %v18_v31, 0.0  ;;  %v27_v36 = vmax.f32 %v19_v32, 0.0  ;;  %v21_v38 = vld [vmem:[%s688_s0 + $0x30] sm:$0xff]  ;;  %v22_v39 = vld [vmem:[%s688_s0 + $0x38] sm:$0xff] }
   0xc   :  { %218 = vmatprep.subr.bf16.mxu0 %v448_v8  ;;  %430 = vmatprep.mubr.bf16.mxu1 %v31_v22  ;;  %v28_v37 = vmax.f32 %v20_v33, 0.0  ;;  %v29_v42 = vmax.f32 %v21_v38, 0.0  ;;  %v30_v43 = vmax.f32 %v22_v39, 0.0  ;;  %v67_v48 = vld [vmem:[%s689_s2] sm:$0x7] }
   0xd   :  { %419 = vmatpush3.bf16.msra.mxu1 %v459_v10  ;;  %v32_v40 = vpack.c.bf16 %v26_v35, %v25_v34  ;;  %v595_v50 = vrot.slane %v67_v48, %v71_v47  ;;  %v597_v51 = vrot.slane %v67_v48, %v75_v49  ;;  %v80_v60 = vrot.slane %v67_v48, %v79_v52 }
   0xe   :  { %420 = vmatprep.subr.bf16.mxu1 %v463_v14  ;;  %v33_v41 = vpack.c.bf16 %v28_v37, %v27_v36  ;;  %v34_v44 = vpack.c.bf16 %v30_v43, %v29_v42 }
   0xf   :  { %219 = vmatpush1.bf16.msra.mxu0 %v450_v11 }
  0x10   :  { %220 = vmatprep.subr.bf16.mxu0 %v452_v12 }
  0x11   :  { %421 = vmatpush3.bf16.msra.mxu1 %v463_v14 }
  0x12   :  { %422 = vmatprep.subr.bf16.mxu1 %v467_v20 }
  0x13   :  { %221 = vmatpush1.bf16.msra.mxu0 %v454_v13 }
  0x14   :  { %222 = vmatprep.subr.bf16.mxu0 %v456_v15 }
  0x15   :  { %423 = vmatpush3.bf16.msra.mxu1 %v467_v20 }
  0x16   :  { %424 = vmatprep.subr.bf16.mxu1 %v468_v24 }
  0x17   :  { %223 = vmatpush1.bf16.msra.mxu0 %v458_v21 }
  0x18   :  { %224 = vmatprep.subr.bf16.mxu0 %v460_v23 }
  0x19   :  { %425 = vmatpush3.bf16.msra.mxu1 %v468_v24 }
  0x1a   :  { %426 = vmatprep.subr.bf16.mxu1 %v469_v27 }
  0x1b   :  { %225 = vmatpush1.bf16.msra.mxu0 %v462_v25 }
  0x1c   :  { %226 = vmatprep.subr.bf16.mxu0 %v464_v26 }
  0x1d   :  { %427 = vmatpush3.bf16.msra.mxu1 %v469_v27 }
  0x1e   :  { %428 = vmatprep.subr.bf16.mxu1 %v470_v29 }
  0x1f   :  { %227 = vmatpush1.bf16.msra.mxu0 %v466_v28 }
  0x21   :  { %429 = vmatpush3.bf16.msra.mxu1 %v470_v29 }
  0x22   :  { %245 = vmatmul.mubr.bf16.vlgmr.msra.gmra.mrb[0].mxu0 %v31_v22 }
  0x23   :  { %254 = vmatprep.mubr.bf16.mxu0 %v471_v1 }
  0x24   :  { %431 = vmatmul.mubr.bf16.vlgmr.msra.gmra.mrb[0].mxu1 %v32_v40 }
  0x25   :  { %434 = vmatprep.mubr.bf16.mxu1 %v33_v41 }
  0x2a   :  { %255 = vmatmul.mubr.bf16.gmra.mrb[4].mxu0 %v32_v40 }
  0x2b   :  { %264 = vmatprep.mubr.bf16.mxu0 %v471_v1 }
  0x2c   :  { %435 = vmatmul.mubr.bf16.gmra.mrb[4].mxu1 %v34_v44 }
  0x32   :  { %265 = vmatmul.mubr.bf16.gmra.mrb[8].mxu0 %v33_v41 }
  0x33   :  { %274 = vmatprep.mubr.bf16.mxu0 %v471_v1 }
  0x3a   :  { %275 = vmatmul.mubr.bf16.gmra.mrb[12].mxu0 %v34_v44 }
  0xf5   :  { %v246_v53 = vpop.f32.mrb[0].mxu0 }
  0xf6   :  { %v247_v54 = vadd.f32 %v246_v53, %v595_v50  ;;  %v248_v55 = vpop.f32.mrb[1].mxu0 }
  0xf7   :  { %v249_v56 = vadd.f32 %v248_v55, %v597_v51  ;;  %v250_v57 = vpop.f32.mrb[2].mxu0  ;;  %v432_v62 = vpop.f32.mrb[0].mxu1 }
  0xf8   :  { %350 = vst [vmem:[%s690_s3] sm:$0xff] %v247_v54  ;;  %v251_v58 = vadd.f32 %v250_v57, %v595_v50  ;;  %v252_v59 = vpop.f32.mrb[3].mxu0  ;;  %v328_v63 = vadd.f32 %v432_v62, %v80_v60  ;;  %v319_v0 = vpop.f32.mrb[1].mxu1 }
  0xf9   :  { %351 = vst [vmem:[%s690_s3 + $0x8] sm:$0xff] %v249_v56  ;;  %v253_v61 = vadd.f32 %v252_v59, %v597_v51  ;;  %v320_v2 = vadd.f32 %v319_v0, %v80_v60  ;;  %v433_v3 = vpop.f32.mrb[2].mxu1 }
  0xfa   :  { %353 = vst [vmem:[%s690_s3 + $0x18] sm:$0xff] %v251_v58  ;;  %358 = vst [vmem:[%s690_s3 + $0x40] sm:$0xff] %v328_v63  ;;  %v331_v6 = vadd.f32 %v433_v3, %v80_v60  ;;  %v322_v7 = vpop.f32.mrb[3].mxu1 }
  0xfb   :  { %354 = vst [vmem:[%s690_s3 + $0x20] sm:$0xff] %v253_v61  ;;  %352 = vst [vmem:[%s690_s3 + $0x10] sm:$0xff] %v320_v2  ;;  %v323_v10 = vadd.f32 %v322_v7, %v80_v60 }
  0xfc   :  { %361 = vst [vmem:[%s690_s3 + $0x58] sm:$0xff] %v331_v6 }
  0xfd   :  { %v256_v1 = vpop.f32.mrb[4].mxu0  ;;  %355 = vst [vmem:[%s690_s3 + $0x28] sm:$0xff] %v323_v10 }
  0xfe   :  { %v257_v4 = vadd.f32 %v256_v1, %v595_v50  ;;  %v258_v5 = vpop.f32.mrb[5].mxu0 }
  0xff   :  { %v259_v8 = vadd.f32 %v258_v5, %v597_v51  ;;  %v260_v9 = vpop.f32.mrb[6].mxu0  ;;  %v436_v14 = vpop.f32.mrb[4].mxu1 }
 0x100   :  { %356 = vst [vmem:[%s690_s3 + $0x30] sm:$0xff] %v257_v4  ;;  %v261_v11 = vadd.f32 %v260_v9, %v595_v50  ;;  %v262_v12 = vpop.f32.mrb[7].mxu0  ;;  %v344_v15 = vadd.f32 %v436_v14, %v80_v60  ;;  %v335_v16 = vpop.f32.mrb[5].mxu1 }
 0x101   :  { %357 = vst [vmem:[%s690_s3 + $0x38] sm:$0xff] %v259_v8  ;;  %v263_v13 = vadd.f32 %v262_v12, %v597_v51  ;;  %v336_v18 = vadd.f32 %v335_v16, %v80_v60  ;;  %v437_v19 = vpop.f32.mrb[6].mxu1 }
 0x102   :  { %359 = vst [vmem:[%s690_s3 + $0x48] sm:$0xff] %v261_v11  ;;  %370 = vst [vmem:[%s690_s3 + $0xa0] sm:$0xff] %v344_v15  ;;  %v347_v22 = vadd.f32 %v437_v19, %v80_v60  ;;  %v338_v23 = vpop.f32.mrb[7].mxu1 }
 0x103   :  { %360 = vst [vmem:[%s690_s3 + $0x50] sm:$0xff] %v263_v13  ;;  %364 = vst [vmem:[%s690_s3 + $0x70] sm:$0xff] %v336_v18  ;;  %v339_v26 = vadd.f32 %v338_v23, %v80_v60 }
 0x104   :  { %373 = vst [vmem:[%s690_s3 + $0xb8] sm:$0xff] %v347_v22 }
 0x105   :  { %v266_v17 = vpop.f32.mrb[8].mxu0  ;;  %367 = vst [vmem:[%s690_s3 + $0x88] sm:$0xff] %v339_v26 }
 0x106   :  { %v267_v20 = vadd.f32 %v266_v17, %v595_v50  ;;  %v268_v21 = vpop.f32.mrb[9].mxu0 }
 0x107   :  { %v269_v24 = vadd.f32 %v268_v21, %v597_v51  ;;  %v270_v25 = vpop.f32.mrb[10].mxu0 }
 0x108   :  { %362 = vst [vmem:[%s690_s3 + $0x60] sm:$0xff] %v267_v20  ;;  %v271_v27 = vadd.f32 %v270_v25, %v595_v50  ;;  %v272_v28 = vpop.f32.mrb[11].mxu0 }
 0x109   :  { %363 = vst [vmem:[%s690_s3 + $0x68] sm:$0xff] %v269_v24  ;;  %v273_v29 = vadd.f32 %v272_v28, %v597_v51 }
 0x10a   :  { %365 = vst [vmem:[%s690_s3 + $0x78] sm:$0xff] %v271_v27 }
 0x10b   :  { %366 = vst [vmem:[%s690_s3 + $0x80] sm:$0xff] %v273_v29 }
 0x10d   :  { %v276_v30 = vpop.f32.mrb[12].mxu0 }
 0x10e   :  { %v277_v31 = vadd.f32 %v276_v30, %v595_v50  ;;  %v278_v32 = vpop.f32.mrb[13].mxu0 }
 0x10f   :  { %v279_v33 = vadd.f32 %v278_v32, %v597_v51  ;;  %v280_v34 = vpop.f32.mrb[14].mxu0 }
 0x110   :  { %368 = vst [vmem:[%s690_s3 + $0x90] sm:$0xff] %v277_v31  ;;  %v281_v35 = vadd.f32 %v280_v34, %v595_v50  ;;  %v282_v36 = vpop.f32.mrb[15].mxu0 }
 0x111   :  { %369 = vst [vmem:[%s690_s3 + $0x98] sm:$0xff] %v279_v33  ;;  %v283_v37 = vadd.f32 %v282_v36, %v597_v51 }
 0x112   :  { %371 = vst [vmem:[%s690_s3 + $0xa8] sm:$0xff] %v281_v35 }
 0x113   :  { %372 = vst [vmem:[%s690_s3 + $0xb0] sm:$0xff] %v283_v37 }

// kernel: relu_rnn_encoder_forward.4
= control target key start
LH: loop header
LB: loop body
LE: loop exit
PB: predicated region body
PF: predicated region fallthrough
CT: control target
= control target key end

     0   :  { %10 = vsyncpa [#allocation3], 0  ;;  %s638_s18 = smov [#allocation2]   ;;  %s813_s0 = inlined_call_operand.vmem [shape: f32[64,16], index: 0, kind: input, shape index: {}]   ;;  %s814_s1 = inlined_call_operand.vmem [shape: bf16[16,128], index: 1, kind: input, shape index: {}]   ;;  %s815_s2 = inlined_call_operand.vmem [shape: f32[1,128], index: 2, kind: input, shape index: {}]   ;;  %s816_s3 = inlined_call_operand.hbm [shape: bf16[128,384], index: 3, kind: input, shape index: {}]   ;;  %s817_s4 = inlined_call_operand.vmem [shape: f32[1,384], index: 4, kind: input, shape index: {}]   ;;  %s818_s5 = inlined_call_operand.vmem [shape: f32[64,384], index: 5, kind: output, shape index: {}]  }
   0x1   :  { %s22_s19 = sshll.u32 %s638_s18, 4  ;;  %s614_s22 = scalar_lea.hbm %s816_s3, 3072  ;;  %s23_s19 = int_to_ptr.vmem [resolvable:$true] %s22_s19 }
   0x2   :  { %p615_p0 = scmp.ne.s32.totalorder %s816_s3, %s614_s22  ;;  %p618_p1 = scmp.lt.u32.totalorder %s614_s22, %s816_s3 }
   0x4   :  { %p620_p2 = pnand %p618_p1, %p615_p0 }
   0x6   :  { %623 = shalt.err (!%p620_p2)
}
   0x7   :  { %s624_s27 = scalar_lea.vmem %s23_s19, 3072  ;;  %p629_p4 = scmp.lt.s32.totalorder %s23_s19, %s23_s19 }
   0x8   :  { %p625_p3 = scmp.ne.s32.totalorder %s23_s19, %s624_s27  ;;  %p630_p5 = scmp.lt.s32.totalorder %s624_s27, %s624_s27 }
   0xa   :  { %p631_p6 = por %p630_p5, %p629_p4 }
   0xc   :  { %p632_p7 = pnand %p631_p6, %p625_p3 }
   0xe   :  { %635 = shalt.err (!%p632_p7)
}
   0xf   :  { %s639_s28 = smov 192   ;;  %s640_s29 = smov 12  }
  0x10   :  { %28 = dma.hbm_to_vmem [thread:$0]  %s816_s3, 3072, %s23_s19, [#allocation3], %s639_s28, %s639_s28, %s640_s29  }
  0x11   :  { %636 = dma.done.wait [#allocation3], 3072  }
  0x12   :  { %637 = vsyncadd [#allocation3], 4294964224  ;;  %v581_v0 = vld [vmem:[%s814_s1] sm:$0xff]   ;;  %v36_v2 = vld [vmem:[%s813_s0 + $0x8] sm:$0xff]  ;;  %vm62_vm0 = vcmask 130048   ;;  %v641_v37 = vmov 0  }
  0x13   :  { %v35_v1 = vld [vmem:[%s813_s0] sm:$0xff]  ;;  %v37_v3 = vld [vmem:[%s813_s0 + $0x10] sm:$0xff]  ;;  %543 = vmatprep.subr.bf16.mxu0 %v581_v0  ;;  %v38_v5 = vld [vmem:[%s813_s0 + $0x18] sm:$0xff]  ;;  %361 = vmatprep.mubr.bf16.mxu1 %v641_v37 }
  0x14   :  { %v43_v4 = vpack.c.bf16 %v36_v2, %v35_v1  ;;  %v39_v6 = vld [vmem:[%s813_s0 + $0x20] sm:$0xff]  ;;  %v40_v7 = vld [vmem:[%s813_s0 + $0x28] sm:$0xff]  ;;  %544 = vmatpush3.bf16.msra.mxu0 %v581_v0  ;;  %v44_v8 = vpack.c.bf16 %v38_v5, %v37_v3  ;;  %v41_v12 = vld [vmem:[%s813_s0 + $0x30] sm:$0xff]  ;;  %v186_v3 = vlaneseq }
  0x15   :  { %v45_v9 = vpack.c.bf16 %v40_v7, %v39_v6  ;;  %v582_v10 = vld [vmem:[#allocation2 + $0x4] ss:$12 sps:$4 sm:$0xff]   ;;  %v584_v11 = vld [vmem:[#allocation2] ss:$12 sps:$4 sm:$0xff]   ;;  %v42_v13 = vld [vmem:[%s813_s0 + $0x38] sm:$0xff] }
  0x16   :  { %545 = vmatprep.mubr.msk.bf16.mxu0 %vm62_vm0, %v43_v4  ;;  %v585_v14 = vld [vmem:[#allocation2 + $0x8] ss:$12 sps:$4 sm:$0xff]   ;;  %329 = vmatprep.subr.bf16.mxu1 %v582_v10  ;;  %v588_v16 = vld [vmem:[#allocation2 + $0x18] ss:$12 sps:$4 sm:$0xff]   ;;  %v589_v17 = vld [vmem:[#allocation2 + $0x20] ss:$12 sps:$4 sm:$0xff]   ;;  %v46_v19 = vpack.c.bf16 %v42_v13, %v41_v12 }
  0x17   :  { %546 = vmatmul.mubr.msk.bf16.vlgmr.msra.gmra.mrb[0].mxu0 %vm62_vm0, %v44_v8  ;;  %v586_v15 = vld [vmem:[#allocation2 + $0x1c] ss:$12 sps:$4 sm:$0xff]   ;;  %330 = vmatpush1.bf16.msra.mxu1 %v584_v11  ;;  %v590_v18 = vld [vmem:[#allocation2 + $0x34] ss:$12 sps:$4 sm:$0xff]   ;;  %v593_v20 = vld [vmem:[#allocation2 + $0x38] ss:$12 sps:$4 sm:$0xff]  }
  0x18   :  { %549 = vmatprep.mubr.msk.bf16.mxu0 %vm62_vm0, %v45_v9  ;;  %553 = vmatprep.subr.bf16.mxu0 %v585_v14  ;;  %v592_v21 = vld [vmem:[#allocation2 + $0x30] ss:$12 sps:$4 sm:$0xff]   ;;  %v594_v22 = vld [vmem:[#allocation2 + $0x4c] ss:$12 sps:$4 sm:$0xff]   ;;  %v596_v24 = vld [vmem:[#allocation2 + $0x48] ss:$12 sps:$4 sm:$0xff]  }
  0x19   :  { %331 = vmatprep.subr.bf16.mxu1 %v586_v15  ;;  %554 = vmatpush3.bf16.msra.mxu0 %v585_v14  ;;  %v597_v23 = vld [vmem:[#allocation2 + $0x50] ss:$12 sps:$4 sm:$0xff]   ;;  %v600_v26 = vld [vmem:[#allocation2 + $0x60] ss:$12 sps:$4 sm:$0xff]   ;;  %v601_v27 = vld [vmem:[#allocation2 + $0x68] ss:$12 sps:$4 sm:$0xff]  }
  0x1a   :  { %555 = vmatprep.subr.bf16.mxu0 %v589_v17  ;;  %v598_v25 = vld [vmem:[#allocation2 + $0x64] ss:$12 sps:$4 sm:$0xff]   ;;  %v602_v28 = vld [vmem:[#allocation2 + $0x7c] ss:$12 sps:$4 sm:$0xff]   ;;  %v605_v29 = vld [vmem:[#allocation2 + $0x80] ss:$12 sps:$4 sm:$0xff]  }
  0x1b   :  { %332 = vmatpush1.bf16.msra.mxu1 %v588_v16  ;;  %v604_v30 = vld [vmem:[#allocation2 + $0x78] ss:$12 sps:$4 sm:$0xff]   ;;  %v606_v31 = vld [vmem:[#allocation2 + $0x94] ss:$12 sps:$4 sm:$0xff]   ;;  %v608_v32 = vld [vmem:[#allocation2 + $0x90] ss:$12 sps:$4 sm:$0xff]  }
  0x1c   :  { %333 = vmatprep.subr.bf16.mxu1 %v590_v18  ;;  %v609_v33 = vld [vmem:[#allocation2 + $0x98] ss:$12 sps:$4 sm:$0xff]   ;;  %v612_v35 = vld [vmem:[#allocation2 + $0xa8] ss:$12 sps:$4 sm:$0xff]   ;;  %v613_v36 = vld [vmem:[#allocation2 + $0xb0] ss:$12 sps:$4 sm:$0xff]  }
  0x1d   :  { %556 = vmatpush3.bf16.msra.mxu0 %v589_v17  ;;  %v610_v34 = vld [vmem:[#allocation2 + $0xac] ss:$12 sps:$4 sm:$0xff]   ;;  %v496_v38 = vld [vmem:[%s815_s2] ss:$0 sm:$0xff]  ;;  %v187_v4 = vshrl.u32 %v186_v3, 7 }
  0x1e   :  { %557 = vmatprep.subr.bf16.mxu0 %v593_v20  ;;  %v184_v6 = vld [vmem:[%s817_s4] sm:$0x7] }
  0x1f   :  { %550 = vmatmul.mubr.msk.bf16.gmra.mrb[4].mxu0 %vm62_vm0, %v46_v19  ;;  %334 = vmatpush1.bf16.msra.mxu1 %v592_v21  ;;  %v188_v5 = vsub.s32 0, %v187_v4  ;;  %v192_v7 = vsub.s32 1, %v187_v4  ;;  %v196_v8 = vsub.s32 2, %v187_v4 }
  0x20   :  { %335 = vmatprep.subr.bf16.mxu1 %v594_v22 }
  0x21   :  { %558 = vmatpush3.bf16.msra.mxu0 %v593_v20  ;;  %v721_v9 = vrot.slane %v184_v6, %v188_v5  ;;  %v723_v10 = vrot.slane %v184_v6, %v192_v7  ;;  %v197_v11 = vrot.slane %v184_v6, %v196_v8 }
  0x22   :  { %559 = vmatprep.subr.bf16.mxu0 %v597_v23 }
  0x23   :  { %336 = vmatpush1.bf16.msra.mxu1 %v596_v24 }
  0x24   :  { %337 = vmatprep.subr.bf16.mxu1 %v598_v25 }
  0x25   :  { %560 = vmatpush3.bf16.msra.mxu0 %v597_v23 }
  0x26   :  { %561 = vmatprep.subr.bf16.mxu0 %v601_v27 }
  0x27   :  { %338 = vmatpush1.bf16.msra.mxu1 %v600_v26 }
  0x28   :  { %339 = vmatprep.subr.bf16.mxu1 %v602_v28 }
  0x29   :  { %562 = vmatpush3.bf16.msra.mxu0 %v601_v27 }
  0x2a   :  { %563 = vmatprep.subr.bf16.mxu0 %v605_v29 }
  0x2b   :  { %340 = vmatpush1.bf16.msra.mxu1 %v604_v30 }
  0x2c   :  { %341 = vmatprep.subr.bf16.mxu1 %v606_v31 }
  0x2d   :  { %564 = vmatpush3.bf16.msra.mxu0 %v605_v29 }
  0x2e   :  { %565 = vmatprep.subr.bf16.mxu0 %v609_v33 }
  0x2f   :  { %342 = vmatpush1.bf16.msra.mxu1 %v608_v32 }
  0x30   :  { %343 = vmatprep.subr.bf16.mxu1 %v610_v34 }
  0x31   :  { %566 = vmatpush3.bf16.msra.mxu0 %v609_v33 }
  0x32   :  { %567 = vmatprep.subr.bf16.mxu0 %v613_v36 }
  0x33   :  { %344 = vmatpush1.bf16.msra.mxu1 %v612_v35 }
  0x35   :  { %568 = vmatpush3.bf16.msra.mxu0 %v613_v36 }
  0xea   :  { %v547_v39 = vpop.f32.mrb[0].mxu0 }
  0xeb   :  { %v118_v40 = vadd.f32 %v547_v39, %v496_v38  ;;  %v109_v41 = vpop.f32.mrb[1].mxu0 }
  0xec   :  { %v110_v42 = vadd.f32 %v496_v38, %v109_v41  ;;  %v548_v43 = vpop.f32.mrb[2].mxu0 }
  0xed   :  { %v121_v44 = vadd.f32 %v548_v43, %v496_v38  ;;  %v112_v45 = vpop.f32.mrb[3].mxu0  ;;  %v142_v47 = vmax.f32 %v118_v40, 0.0 }
  0xee   :  { %v113_v46 = vadd.f32 %v496_v38, %v112_v45  ;;  %v140_v49 = vmax.f32 %v110_v42, 0.0 }
  0xef   :  { %v143_v48 = vmax.f32 %v121_v44, 0.0 }
  0xf0   :  { %v141_v50 = vmax.f32 %v113_v46, 0.0 }
  0xf1   :  { %v149_v51 = vpack.c.bf16 %v143_v48, %v142_v47 }
  0xf2   :  { %v148_v52 = vpack.c.bf16 %v141_v50, %v140_v49  ;;  %v551_v53 = vpop.f32.mrb[4].mxu0 }
  0xf3   :  { %v134_v54 = vadd.f32 %v551_v53, %v496_v38  ;;  %v125_v55 = vpop.f32.mrb[5].mxu0 }
  0xf4   :  { %v126_v56 = vadd.f32 %v496_v38, %v125_v55  ;;  %362 = vmatmul.mubr.bf16.vlgmr.msra.gmra.mrb[0].mxu1 %v148_v52  ;;  %569 = vmatprep.mubr.bf16.mxu0 %v148_v52  ;;  %v552_v57 = vpop.f32.mrb[6].mxu0 }
  0xf5   :  { %v146_v58 = vmax.f32 %v134_v54, 0.0  ;;  %v137_v59 = vadd.f32 %v552_v57, %v496_v38  ;;  %570 = vmatmul.mubr.bf16.vlgmr.msra.gmra.mrb[8].mxu0 %v149_v51  ;;  %v128_v60 = vpop.f32.mrb[7].mxu0  ;;  %371 = vmatprep.mubr.bf16.mxu1 %v641_v37 }
  0xf6   :  { %v144_v61 = vmax.f32 %v126_v56, 0.0  ;;  %v129_v62 = vadd.f32 %v496_v38, %v128_v60 }
  0xf7   :  { %v147_v63 = vmax.f32 %v137_v59, 0.0 }
  0xf8   :  { %v145_v0 = vmax.f32 %v129_v62, 0.0 }
  0xf9   :  { %v151_v1 = vpack.c.bf16 %v147_v63, %v146_v58 }
  0xfa   :  { %v150_v2 = vpack.c.bf16 %v145_v0, %v144_v61 }
  0xfc   :  { %372 = vmatmul.mubr.bf16.gmra.mrb[4].mxu1 %v149_v51  ;;  %573 = vmatprep.mubr.bf16.mxu0 %v150_v2 }
  0xfd   :  { %574 = vmatmul.mubr.bf16.gmra.mrb[12].mxu0 %v151_v1  ;;  %381 = vmatprep.mubr.bf16.mxu1 %v641_v37 }
 0x104   :  { %382 = vmatmul.mubr.bf16.gmra.mrb[8].mxu1 %v150_v2 }
 0x105   :  { %391 = vmatprep.mubr.bf16.mxu1 %v641_v37 }
 0x10c   :  { %392 = vmatmul.mubr.bf16.gmra.mrb[12].mxu1 %v151_v1 }
 0x1c7   :  { %v363_v12 = vpop.f32.mrb[0].mxu1 }
 0x1c8   :  { %v364_v13 = vadd.f32 %v363_v12, %v721_v9  ;;  %v365_v14 = vpop.f32.mrb[1].mxu1  ;;  %v571_v15 = vpop.f32.mrb[8].mxu0 }
 0x1c9   :  { %v366_v16 = vadd.f32 %v365_v14, %v723_v10  ;;  %v445_v17 = vadd.f32 %v571_v15, %v197_v11  ;;  %v367_v18 = vpop.f32.mrb[2].mxu1  ;;  %v436_v19 = vpop.f32.mrb[9].mxu0 }
 0x1ca   :  { %467 = vst [vmem:[%s818_s5] sm:$0xff] %v364_v13  ;;  %v368_v20 = vadd.f32 %v367_v18, %v721_v9  ;;  %v437_v21 = vadd.f32 %v436_v19, %v197_v11  ;;  %v369_v22 = vpop.f32.mrb[3].mxu1  ;;  %v572_v23 = vpop.f32.mrb[10].mxu0 }
 0x1cb   :  { %468 = vst [vmem:[%s818_s5 + $0x8] sm:$0xff] %v366_v16  ;;  %475 = vst [vmem:[%s818_s5 + $0x40] sm:$0xff] %v445_v17  ;;  %v370_v24 = vadd.f32 %v369_v22, %v723_v10  ;;  %v448_v25 = vadd.f32 %v572_v23, %v197_v11  ;;  %v439_v26 = vpop.f32.mrb[11].mxu0 }
 0x1cc   :  { %470 = vst [vmem:[%s818_s5 + $0x18] sm:$0xff] %v368_v20  ;;  %469 = vst [vmem:[%s818_s5 + $0x10] sm:$0xff] %v437_v21  ;;  %v440_v27 = vadd.f32 %v439_v26, %v197_v11 }
 0x1cd   :  { %471 = vst [vmem:[%s818_s5 + $0x20] sm:$0xff] %v370_v24  ;;  %478 = vst [vmem:[%s818_s5 + $0x58] sm:$0xff] %v448_v25 }
 0x1ce   :  { %472 = vst [vmem:[%s818_s5 + $0x28] sm:$0xff] %v440_v27 }
 0x1cf   :  { %v373_v28 = vpop.f32.mrb[4].mxu1 }
 0x1d0   :  { %v374_v29 = vadd.f32 %v373_v28, %v721_v9  ;;  %v375_v30 = vpop.f32.mrb[5].mxu1  ;;  %v575_v31 = vpop.f32.mrb[12].mxu0 }
 0x1d1   :  { %v376_v32 = vadd.f32 %v375_v30, %v723_v10  ;;  %v377_v33 = vpop.f32.mrb[6].mxu1  ;;  %v461_v34 = vadd.f32 %v575_v31, %v197_v11  ;;  %v452_v35 = vpop.f32.mrb[13].mxu0 }
 0x1d2   :  { %473 = vst [vmem:[%s818_s5 + $0x30] sm:$0xff] %v374_v29  ;;  %v378_v36 = vadd.f32 %v377_v33, %v721_v9  ;;  %v379_v37 = vpop.f32.mrb[7].mxu1  ;;  %v453_v38 = vadd.f32 %v452_v35, %v197_v11  ;;  %v576_v39 = vpop.f32.mrb[14].mxu0 }
 0x1d3   :  { %474 = vst [vmem:[%s818_s5 + $0x38] sm:$0xff] %v376_v32  ;;  %487 = vst [vmem:[%s818_s5 + $0xa0] sm:$0xff] %v461_v34  ;;  %v380_v40 = vadd.f32 %v379_v37, %v723_v10  ;;  %v464_v41 = vadd.f32 %v576_v39, %v197_v11  ;;  %v455_v42 = vpop.f32.mrb[15].mxu0 }
 0x1d4   :  { %476 = vst [vmem:[%s818_s5 + $0x48] sm:$0xff] %v378_v36  ;;  %481 = vst [vmem:[%s818_s5 + $0x70] sm:$0xff] %v453_v38  ;;  %v456_v43 = vadd.f32 %v455_v42, %v197_v11 }
 0x1d5   :  { %477 = vst [vmem:[%s818_s5 + $0x50] sm:$0xff] %v380_v40  ;;  %490 = vst [vmem:[%s818_s5 + $0xb8] sm:$0xff] %v464_v41 }
 0x1d6   :  { %484 = vst [vmem:[%s818_s5 + $0x88] sm:$0xff] %v456_v43 }
 0x1d7   :  { %v383_v44 = vpop.f32.mrb[8].mxu1 }
 0x1d8   :  { %v384_v45 = vadd.f32 %v383_v44, %v721_v9  ;;  %v385_v46 = vpop.f32.mrb[9].mxu1 }
 0x1d9   :  { %v386_v47 = vadd.f32 %v385_v46, %v723_v10  ;;  %v387_v48 = vpop.f32.mrb[10].mxu1 }
 0x1da   :  { %479 = vst [vmem:[%s818_s5 + $0x60] sm:$0xff] %v384_v45  ;;  %v388_v49 = vadd.f32 %v387_v48, %v721_v9  ;;  %v389_v50 = vpop.f32.mrb[11].mxu1 }
 0x1db   :  { %480 = vst [vmem:[%s818_s5 + $0x68] sm:$0xff] %v386_v47  ;;  %v390_v51 = vadd.f32 %v389_v50, %v723_v10 }
 0x1dc   :  { %482 = vst [vmem:[%s818_s5 + $0x78] sm:$0xff] %v388_v49 }
 0x1dd   :  { %483 = vst [vmem:[%s818_s5 + $0x80] sm:$0xff] %v390_v51 }
 0x1df   :  { %v393_v52 = vpop.f32.mrb[12].mxu1 }
 0x1e0   :  { %v394_v53 = vadd.f32 %v393_v52, %v721_v9  ;;  %v395_v54 = vpop.f32.mrb[13].mxu1 }
 0x1e1   :  { %v396_v55 = vadd.f32 %v395_v54, %v723_v10  ;;  %v397_v56 = vpop.f32.mrb[14].mxu1 }
 0x1e2   :  { %485 = vst [vmem:[%s818_s5 + $0x90] sm:$0xff] %v394_v53  ;;  %v398_v57 = vadd.f32 %v397_v56, %v721_v9  ;;  %v399_v58 = vpop.f32.mrb[15].mxu1 }
 0x1e3   :  { %486 = vst [vmem:[%s818_s5 + $0x98] sm:$0xff] %v396_v55  ;;  %v400_v59 = vadd.f32 %v399_v58, %v723_v10 }
 0x1e4   :  { %488 = vst [vmem:[%s818_s5 + $0xa8] sm:$0xff] %v398_v57 }
 0x1e5   :  { %489 = vst [vmem:[%s818_s5 + $0xb0] sm:$0xff] %v400_v59 }
 0x1e6   :  { %495 = vsyncpa [#allocation3], 1 }

// kernel: relu_rnn_encoder_forward.5
= control target key start
LH: loop header
LB: loop body
LE: loop exit
PB: predicated region body
PF: predicated region fallthrough
CT: control target
= control target key end

     0   :  { %v2433_v3 = vmov 0.0|0.0   ;;  %v2434_v4 = vmov 0.0   ;;  %vm2435_vm0 = vmmov 0   ;;  %s3114_s2 = inlined_call_operand.vmem [shape: f32[128,384], index: 2, kind: input, shape index: {}]   ;;  %s3115_s1 = inlined_call_operand.vmem [shape: f32[8,128], index: 1, kind: input, shape index: {}]   ;;  %s3116_s3 = inlined_call_operand.vmem [shape: f32[1,384], index: 3, kind: input, shape index: {}]   ;;  %s3117_s0 = inlined_call_operand.vmem [shape: f32[8,8,384], index: 0, kind: input, shape index: {}]   ;;  %s3118_s4 = inlined_call_operand.vmem [shape: f32[8,8,128], index: 4, kind: output, shape index: {0}]   ;;  %s3119_s5 = inlined_call_operand.vmem [shape: f32[8,128], index: 5, kind: output, shape index: {1}]  }
   0x1   :  { %v26_v0 = vld [vmem:[%s3114_s2 + $0x8] sm:$0xff]  ;;  %v29_v1 = vld [vmem:[%s3114_s2 + $0x20] sm:$0xff]  ;;  %1934 = vmatprep.subr.bf16.mxu1 %v2433_v3  ;;  %155 = vmatprep.mubr.f32.mxu0 %v2434_v4  ;;  %v28_v6 = vld [vmem:[%s3114_s2 + $0x18] sm:$0xff] }
   0x2   :  { %v25_v2 = vld [vmem:[%s3114_s2] sm:$0xff]  ;;  %v2477_v5 = vpack.c.bf16 %v29_v1, %v26_v0  ;;  %v32_v7 = vld [vmem:[%s3114_s2 + $0x38] sm:$0xff]  ;;  %v35_v8 = vld [vmem:[%s3114_s2 + $0x50] sm:$0xff]  ;;  %1654 = vmatprep.mubr.msk.f32.mxu1 %vm2435_vm0, %v2434_v4 }
   0x3   :  { %v2490_v9 = vpack.c.bf16 %v28_v6, %v25_v2  ;;  %v2492_v10 = vpack.c.bf16 %v35_v8, %v32_v7  ;;  %v31_v11 = vld [vmem:[%s3114_s2 + $0x30] sm:$0xff]  ;;  %v34_v12 = vld [vmem:[%s3114_s2 + $0x48] sm:$0xff]  ;;  %v41_v14 = vld [vmem:[%s3114_s2 + $0x80] sm:$0xff] }
   0x4   :  { %v38_v13 = vld [vmem:[%s3114_s2 + $0x68] sm:$0xff]  ;;  %1903 = vmatprep.subr.bf16.mxu0 %v2477_v5  ;;  %v2508_v15 = vpack.c.bf16 %v34_v12, %v31_v11  ;;  %v37_v17 = vld [vmem:[%s3114_s2 + $0x60] sm:$0xff]  ;;  %v40_v18 = vld [vmem:[%s3114_s2 + $0x78] sm:$0xff] }
   0x5   :  { %1905 = vmatpush1.bf16.msra.mxu0 %v2490_v9  ;;  %v2511_v16 = vpack.c.bf16 %v41_v14, %v38_v13  ;;  %v44_v19 = vld [vmem:[%s3114_s2 + $0x98] sm:$0xff]  ;;  %v47_v20 = vld [vmem:[%s3114_s2 + $0xb0] sm:$0xff]  ;;  %v2526_v21 = vpack.c.bf16 %v40_v18, %v37_v17  ;;  %v46_v24 = vld [vmem:[%s3114_s2 + $0xa8] sm:$0xff]  ;;  %v76_v18 = vlaneseq }
   0x6   :  { %1907 = vmatprep.subr.bf16.mxu0 %v2492_v10  ;;  %v2529_v22 = vpack.c.bf16 %v47_v20, %v44_v19  ;;  %v43_v23 = vld [vmem:[%s3114_s2 + $0x90] sm:$0xff]  ;;  %v50_v25 = vld [vmem:[%s3114_s2 + $0xc8] sm:$0xff]  ;;  %v53_v26 = vld [vmem:[%s3114_s2 + $0xe0] sm:$0xff] }
   0x7   :  { %v27_v27 = vld [vmem:[%s3114_s2 + $0x10] sm:$0xff]  ;;  %v30_v28 = vld [vmem:[%s3114_s2 + $0x28] sm:$0xff]  ;;  %v33_v30 = vld [vmem:[%s3114_s2 + $0x40] sm:$0xff]  ;;  %v2555_v31 = vpack.c.bf16 %v46_v24, %v43_v23  ;;  %v2561_v33 = vpack.c.bf16 %v53_v26, %v50_v25  ;;  %v77_v19 = vshrl.u32 %v76_v18, 7 }
   0x8   :  { %v2549_v29 = vpack.c.bf16 %v30_v28, %v27_v27  ;;  %v36_v32 = vld [vmem:[%s3114_s2 + $0x58] sm:$0xff]  ;;  %v49_v34 = vld [vmem:[%s3114_s2 + $0xc0] sm:$0xff]  ;;  %v59_v38 = vld [vmem:[%s3114_s2 + $0x110] sm:$0xff] }
   0x9   :  { %1909 = vmatpush1.bf16.msra.mxu0 %v2508_v15  ;;  %v52_v35 = vld [vmem:[%s3114_s2 + $0xd8] sm:$0xff]  ;;  %v2573_v37 = vpack.c.bf16 %v36_v32, %v33_v30  ;;  %v39_v39 = vld [vmem:[%s3114_s2 + $0x70] sm:$0xff]  ;;  %v42_v40 = vld [vmem:[%s3114_s2 + $0x88] sm:$0xff]  ;;  %v78_v20 = vsub.s32 0, %v77_v19  ;;  %v82_v24 = vsub.s32 1, %v77_v19 }
   0xa   :  { %1911 = vmatprep.subr.bf16.mxu0 %v2511_v16  ;;  %v56_v36 = vld [vmem:[%s3114_s2 + $0xf8] sm:$0xff]  ;;  %1936 = vmatpush3.bf16.msra.mxu1 %v2549_v29  ;;  %v2586_v41 = vpack.c.bf16 %v52_v35, %v49_v34  ;;  %v55_v43 = vld [vmem:[%s3114_s2 + $0xf0] sm:$0xff]  ;;  %v58_v44 = vld [vmem:[%s3114_s2 + $0x108] sm:$0xff]  ;;  %v2601_v46 = vpack.c.bf16 %v42_v40, %v39_v39 }
   0xb   :  { %1937 = vmatprep.subr.bf16.mxu1 %v2433_v3  ;;  %v2589_v42 = vpack.c.bf16 %v59_v38, %v56_v36  ;;  %v62_v45 = vld [vmem:[%s3114_s2 + $0x128] sm:$0xff]  ;;  %v65_v47 = vld [vmem:[%s3114_s2 + $0x140] sm:$0xff]  ;;  %v48_v49 = vld [vmem:[%s3114_s2 + $0xb8] sm:$0xff]  ;;  %v2614_v50 = vpack.c.bf16 %v58_v44, %v55_v43 }
   0xc   :  { %v45_v48 = vld [vmem:[%s3114_s2 + $0xa0] sm:$0xff]  ;;  %v2617_v51 = vpack.c.bf16 %v65_v47, %v62_v45  ;;  %v64_v53 = vld [vmem:[%s3114_s2 + $0x138] sm:$0xff]  ;;  %v71_v56 = vld [vmem:[%s3114_s2 + $0x170] sm:$0xff] }
   0xd   :  { %1913 = vmatpush1.bf16.msra.mxu0 %v2526_v21  ;;  %v61_v52 = vld [vmem:[%s3114_s2 + $0x120] sm:$0xff]  ;;  %v68_v54 = vld [vmem:[%s3114_s2 + $0x158] sm:$0xff]  ;;  %v2629_v55 = vpack.c.bf16 %v48_v49, %v45_v48  ;;  %v51_v57 = vld [vmem:[%s3114_s2 + $0xd0] sm:$0xff]  ;;  %v86_v48 = vsub.s32 2, %v77_v19 }
   0xe   :  { %1915 = vmatprep.subr.bf16.mxu0 %v2529_v22  ;;  %1939 = vmatpush3.bf16.msra.mxu1 %v2573_v37  ;;  %v54_v58 = vld [vmem:[%s3114_s2 + $0xe8] sm:$0xff]  ;;  %v2642_v59 = vpack.c.bf16 %v64_v53, %v61_v52  ;;  %v2645_v60 = vpack.c.bf16 %v71_v56, %v68_v54  ;;  %v67_v61 = vld [vmem:[%s3114_s2 + $0x150] sm:$0xff]  ;;  %v57_v0 = vld [vmem:[%s3114_s2 + $0x100] sm:$0xff] }
   0xf   :  { %1940 = vmatprep.subr.bf16.mxu1 %v2433_v3  ;;  %v70_v62 = vld [vmem:[%s3114_s2 + $0x168] sm:$0xff]  ;;  %v2654_v63 = vpack.c.bf16 %v54_v58, %v51_v57  ;;  %v60_v1 = vld [vmem:[%s3114_s2 + $0x118] sm:$0xff]  ;;  %v63_v7 = vld [vmem:[%s3114_s2 + $0x130] sm:$0xff] }
  0x10   :  { %v2664_v2 = vpack.c.bf16 %v70_v62, %v67_v61  ;;  %v2668_v6 = vpack.c.bf16 %v60_v1, %v57_v0  ;;  %v66_v8 = vld [vmem:[%s3114_s2 + $0x148] sm:$0xff]  ;;  %v2681_v11 = vld [vmem:[%s3115_s1] sm:$0xff]  ;;  %v72_v14 = vld [vmem:[%s3114_s2 + $0x178] sm:$0xff] }
  0x11   :  { %1917 = vmatpush1.bf16.msra.mxu0 %v2555_v31  ;;  %v2684_v12 = vpack.c.bf16 %v66_v8, %v63_v7  ;;  %v69_v13 = vld [vmem:[%s3114_s2 + $0x160] sm:$0xff]  ;;  %v233_v36 = vld [vmem:[%s3117_s0 + $0x8] sm:$0xff]  ;;  %v234_v57 = vld [vmem:[%s3117_s0 + $0x10] sm:$0xff] }
  0x12   :  { %1919 = vmatprep.subr.bf16.mxu0 %v2561_v33  ;;  %1942 = vmatpush3.bf16.msra.mxu1 %v2601_v46  ;;  %v2698_v17 = vpack.c.bf16 %v72_v14, %v69_v13  ;;  %v73_v23 = vld [vmem:[%s3116_s3] sm:$0x7]  ;;  %v1444_v14 = vld [vmem:[%s3117_s0 + $0x18] sm:$0xff] }
  0x13   :  { %1943 = vmatprep.subr.bf16.mxu1 %v2433_v3  ;;  %v2740_v25 = vrot.slane %v73_v23, %v78_v20  ;;  %v2742_v26 = vrot.slane %v73_v23, %v82_v24  ;;  %v232_v28 = vld [vmem:[%s3117_s0] sm:$0xff]  ;;  %v2752_v49 = vrot.slane %v73_v23, %v86_v48 }
  0x15   :  { %1921 = vmatpush1.bf16.msra.mxu0 %v2586_v41 }
  0x16   :  { %1923 = vmatprep.subr.bf16.mxu0 %v2589_v42  ;;  %1945 = vmatpush3.bf16.msra.mxu1 %v2629_v55 }
  0x17   :  { %1946 = vmatprep.subr.bf16.mxu1 %v2433_v3 }
  0x19   :  { %1925 = vmatpush1.bf16.msra.mxu0 %v2614_v50 }
  0x1a   :  { %1927 = vmatprep.subr.bf16.mxu0 %v2617_v51  ;;  %1948 = vmatpush3.bf16.msra.mxu1 %v2654_v63 }
  0x1b   :  { %1949 = vmatprep.subr.bf16.mxu1 %v2433_v3 }
  0x1d   :  { %1929 = vmatpush1.bf16.msra.mxu0 %v2642_v59 }
  0x1e   :  { %1931 = vmatprep.subr.bf16.mxu0 %v2645_v60  ;;  %1951 = vmatpush3.bf16.msra.mxu1 %v2668_v6 }
  0x1f   :  { %1952 = vmatprep.subr.bf16.mxu1 %v2433_v3 }
  0x21   :  { %1933 = vmatpush1.bf16.msra.mxu0 %v2664_v2 }
  0x22   :  { %1959 = vmatprep.subr.bf16.mxu0 %v2477_v5  ;;  %1954 = vmatpush3.bf16.msra.mxu1 %v2684_v12 }
  0x23   :  { %1955 = vmatprep.subr.bf16.mxu1 %v2433_v3 }
  0x24   :  { %156 = vmatmul.mubr.f32.vlgmr.msra.gmra.mrb[0].mxu0 %v2681_v11 }
  0x25   :  { %1961 = vmatpush1.bf16.msra.mxu0 %v2490_v9  ;;  %321 = vmatprep.mubr.f32.mxu0 %v2434_v4 }
  0x26   :  { %1963 = vmatprep.subr.bf16.mxu0 %v2492_v10  ;;  %1957 = vmatpush3.bf16.msra.mxu1 %v2698_v17 }
  0x27   :  { %1990 = vmatprep.subr.bf16.mxu1 %v2433_v3 }
  0x29   :  { %1965 = vmatpush1.bf16.msra.mxu0 %v2508_v15  ;;  %1655 = vmatmul.mubr.f32.vlgmr.msra.gmra.mrb[0].mxu1 %v2681_v11 }
  0x2a   :  { %1967 = vmatprep.subr.bf16.mxu0 %v2511_v16  ;;  %1992 = vmatpush3.bf16.msra.mxu1 %v2549_v29 }
  0x2b   :  { %1993 = vmatprep.subr.bf16.mxu1 %v2433_v3  ;;  %1689 = vmatprep.mubr.msk.f32.mxu1 %vm2435_vm0, %v2434_v4 }
  0x2d   :  { %1969 = vmatpush1.bf16.msra.mxu0 %v2526_v21 }
  0x2e   :  { %1971 = vmatprep.subr.bf16.mxu0 %v2529_v22  ;;  %1995 = vmatpush3.bf16.msra.mxu1 %v2573_v37 }
  0x2f   :  { %1996 = vmatprep.subr.bf16.mxu1 %v2433_v3 }
  0x31   :  { %1973 = vmatpush1.bf16.msra.mxu0 %v2555_v31 }
  0x32   :  { %1975 = vmatprep.subr.bf16.mxu0 %v2561_v33  ;;  %1998 = vmatpush3.bf16.msra.mxu1 %v2601_v46 }
  0x33   :  { %1999 = vmatprep.subr.bf16.mxu1 %v2433_v3 }
  0x35   :  { %1977 = vmatpush1.bf16.msra.mxu0 %v2586_v41 }
  0x36   :  { %1979 = vmatprep.subr.bf16.mxu0 %v2589_v42  ;;  %2001 = vmatpush3.bf16.msra.mxu1 %v2629_v55 }
  0x37   :  { %2002 = vmatprep.subr.bf16.mxu1 %v2433_v3 }
  0x39   :  { %1981 = vmatpush1.bf16.msra.mxu0 %v2614_v50 }
  0x3a   :  { %1983 = vmatprep.subr.bf16.mxu0 %v2617_v51  ;;  %2004 = vmatpush3.bf16.msra.mxu1 %v2654_v63 }
  0x3b   :  { %2005 = vmatprep.subr.bf16.mxu1 %v2433_v3 }
  0x3d   :  { %1985 = vmatpush1.bf16.msra.mxu0 %v2642_v59 }
  0x3e   :  { %1987 = vmatprep.subr.bf16.mxu0 %v2645_v60  ;;  %2007 = vmatpush3.bf16.msra.mxu1 %v2668_v6 }
  0x3f   :  { %2008 = vmatprep.subr.bf16.mxu1 %v2433_v3 }
  0x41   :  { %1989 = vmatpush1.bf16.msra.mxu0 %v2664_v2 }
  0x42   :  { %2015 = vmatprep.subr.bf16.mxu0 %v2477_v5  ;;  %2010 = vmatpush3.bf16.msra.mxu1 %v2684_v12 }
  0x43   :  { %2011 = vmatprep.subr.bf16.mxu1 %v2433_v3 }
  0x46   :  { %2013 = vmatpush3.bf16.msra.mxu1 %v2698_v17 }
  0x47   :  { %2046 = vmatprep.subr.bf16.mxu1 %v2433_v3 }
  0xf7   :  { %v157_v27 = vpop.f32.mrb[0].mxu0 }
  0xf8   :  { %v158_v30 = vadd.f32 %v157_v27, %v2740_v25  ;;  %v159_v32 = vpop.f32.mrb[1].mxu0 }
  0xf9   :  { %v160_v34 = vadd.f32 %v159_v32, %v2742_v26 }
  0xfa   :  { %v235_v35 = vadd.f32 %v232_v28, %v158_v30  ;;  %v1445_v28 = vld [vmem:[%s3117_s0 + $0x20] sm:$0xff] }
  0xfb   :  { %v242_v39 = vadd.f32 %v233_v36, %v160_v34 }
  0xfc   :  { %v1442_v38 = vmul.f32 -1.442695, %v235_v35  ;;  %v228_v40 = vpop.f32.mrb[0].mxu1 }
  0xfd   :  { %v1443_v43 = vmul.f32 -1.442695, %v242_v39  ;;  %v1656_v44 = vpop.f32.mrb[1].mxu1  ;;  %v229_v54 = vadd.f32 %v228_v40, %v2752_v49 }
  0xfe   :  { %2353 = vpow2.f32 %v1442_v38  ;;  %v1446_v44 = vld [vmem:[%s3117_s0 + $0x28] sm:$0xff] }
  0xff   :  { %2355 = vpow2.f32 %v1443_v43 }
 0x108   :  { %v2354_v45 = vpop.eup %2353 }
 0x109   :  { %v239_v47 = vadd.f32 1.0, %v2354_v45  ;;  %v2356_v52 = vpop.eup %2355 }
 0x10a   :  { %v246_v53 = vadd.f32 1.0, %v2356_v52 }
 0x10b   :  { %2357 = vrcp.f32 %v239_v47 }
 0x10c   :  { %2359 = vrcp.f32 %v246_v53 }
 0x115   :  { %v2358_v56 = vpop.eup %2357 }
 0x116   :  { %v249_v58 = vmul.f32 %v2358_v56, %v229_v54  ;;  %v2360_v62 = vpop.eup %2359 }
 0x117   :  { %v252_v0 = vsub.f32 1.0, %v2360_v62  ;;  %v254_v8 = vmul.f32 %v2360_v62, %v2681_v11 }
 0x118   :  { %v250_v61 = vadd.f32 %v249_v58, %v234_v57 }
 0x11a   :  { %2361 = vtanh.f32 %v250_v61  ;;  %v1450_v61 = vld [vmem:[%s3117_s0 + $0x30] sm:$0xff] }
 0x124   :  { %v2362_v1 = vpop.eup %2361 }
 0x125   :  { %v253_v7 = vmul.f32 %v2362_v1, %v252_v0 }
 0x127   :  { %v2759_v13 = vadd.f32 %v254_v8, %v253_v7 }
 0x129   :  { %256 = vst [vmem:[%s3118_s4] sm:$0xff] %v2759_v13  ;;  %322 = vmatmul.mubr.f32.vlgmr.msra.gmra.mrb[2].mxu0 %v2759_v13  ;;  %1690 = vmatmul.mubr.f32.vlgmr.msra.gmra.mrb[2].mxu1 %v2759_v13 }
 0x12a   :  { %2017 = vmatpush1.bf16.msra.mxu0 %v2490_v9  ;;  %2048 = vmatpush3.bf16.msra.mxu1 %v2549_v29 }
 0x12b   :  { %2019 = vmatprep.subr.bf16.mxu0 %v2492_v10  ;;  %2049 = vmatprep.subr.bf16.mxu1 %v2433_v3 }
 0x12c   :  { %489 = vmatprep.mubr.f32.mxu0 %v2434_v4  ;;  %1724 = vmatprep.mubr.msk.f32.mxu1 %vm2435_vm0, %v2434_v4 }
 0x12e   :  { %2021 = vmatpush1.bf16.msra.mxu0 %v2508_v15  ;;  %2051 = vmatpush3.bf16.msra.mxu1 %v2573_v37 }
 0x12f   :  { %2023 = vmatprep.subr.bf16.mxu0 %v2511_v16  ;;  %2052 = vmatprep.subr.bf16.mxu1 %v2433_v3 }
 0x132   :  { %2025 = vmatpush1.bf16.msra.mxu0 %v2526_v21  ;;  %2054 = vmatpush3.bf16.msra.mxu1 %v2601_v46 }
 0x133   :  { %2027 = vmatprep.subr.bf16.mxu0 %v2529_v22  ;;  %2055 = vmatprep.subr.bf16.mxu1 %v2433_v3 }
 0x136   :  { %2029 = vmatpush1.bf16.msra.mxu0 %v2555_v31  ;;  %2057 = vmatpush3.bf16.msra.mxu1 %v2629_v55 }
 0x137   :  { %2031 = vmatprep.subr.bf16.mxu0 %v2561_v33  ;;  %2058 = vmatprep.subr.bf16.mxu1 %v2433_v3 }
 0x13a   :  { %2033 = vmatpush1.bf16.msra.mxu0 %v2586_v41  ;;  %2060 = vmatpush3.bf16.msra.mxu1 %v2654_v63 }
 0x13b   :  { %2035 = vmatprep.subr.bf16.mxu0 %v2589_v42  ;;  %2061 = vmatprep.subr.bf16.mxu1 %v2433_v3 }
 0x13e   :  { %2037 = vmatpush1.bf16.msra.mxu0 %v2614_v50  ;;  %2063 = vmatpush3.bf16.msra.mxu1 %v2668_v6 }
 0x13f   :  { %2039 = vmatprep.subr.bf16.mxu0 %v2617_v51  ;;  %2064 = vmatprep.subr.bf16.mxu1 %v2433_v3 }
 0x142   :  { %2041 = vmatpush1.bf16.msra.mxu0 %v2642_v59  ;;  %2066 = vmatpush3.bf16.msra.mxu1 %v2684_v12 }
 0x143   :  { %2043 = vmatprep.subr.bf16.mxu0 %v2645_v60  ;;  %2067 = vmatprep.subr.bf16.mxu1 %v2433_v3 }
 0x146   :  { %2045 = vmatpush1.bf16.msra.mxu0 %v2664_v2  ;;  %2069 = vmatpush3.bf16.msra.mxu1 %v2698_v17 }
 0x147   :  { %2071 = vmatprep.subr.bf16.mxu0 %v2477_v5  ;;  %2102 = vmatprep.subr.bf16.mxu1 %v2433_v3 }
 0x1fc   :  { %v323_v11 = vpop.f32.mrb[2].mxu0  ;;  %v394_v18 = vpop.f32.mrb[2].mxu1 }
 0x1fd   :  { %v324_v19 = vadd.f32 %v323_v11, %v2740_v25  ;;  %v325_v20 = vpop.f32.mrb[3].mxu0  ;;  %v1691_v23 = vpop.f32.mrb[3].mxu1  ;;  %v395_v40 = vadd.f32 %v394_v18, %v2752_v49  ;;  %v1451_v11 = vld [vmem:[%s3117_s0 + $0x38] sm:$0xff] }
 0x1fe   :  { %v326_v24 = vadd.f32 %v325_v20, %v2742_v26 }
 0x1ff   :  { %v402_v27 = vadd.f32 %v1444_v14, %v324_v19 }
 0x200   :  { %v409_v32 = vadd.f32 %v1445_v28, %v326_v24 }
 0x201   :  { %v1447_v30 = vmul.f32 -1.442695, %v402_v27 }
 0x202   :  { %v1448_v34 = vmul.f32 -1.442695, %v409_v32  ;;  %v1452_v32 = vld [vmem:[%s3117_s0 + $0x40] sm:$0xff] }
 0x203   :  { %2363 = vpow2.f32 %v1447_v30 }
 0x204   :  { %2365 = vpow2.f32 %v1448_v34 }
 0x20d   :  { %v2364_v35 = vpop.eup %2363 }
 0x20e   :  { %v406_v36 = vadd.f32 1.0, %v2364_v35  ;;  %v2366_v38 = vpop.eup %2365 }
 0x20f   :  { %v413_v39 = vadd.f32 1.0, %v2366_v38 }
 0x210   :  { %2367 = vrcp.f32 %v406_v36 }
 0x211   :  { %2369 = vrcp.f32 %v413_v39 }
 0x21a   :  { %v2368_v43 = vpop.eup %2367 }
 0x21b   :  { %v416_v45 = vmul.f32 %v2368_v43, %v395_v40  ;;  %v2370_v48 = vpop.eup %2369 }
 0x21c   :  { %v419_v52 = vsub.f32 1.0, %v2370_v48  ;;  %v421_v56 = vmul.f32 %v2370_v48, %v2759_v13 }
 0x21d   :  { %v417_v47 = vadd.f32 %v1446_v44, %v416_v45 }
 0x21f   :  { %2371 = vtanh.f32 %v417_v47  ;;  %v1456_v47 = vld [vmem:[%s3117_s0 + $0x48] sm:$0xff] }
 0x229   :  { %v2372_v53 = vpop.eup %2371 }
 0x22a   :  { %v420_v54 = vmul.f32 %v2372_v53, %v419_v52 }
 0x22c   :  { %v2815_v57 = vadd.f32 %v421_v56, %v420_v54 }
 0x22e   :  { %1449 = vst [vmem:[%s3118_s4 + $0x8] sm:$0xff] %v2815_v57  ;;  %490 = vmatmul.mubr.f32.vlgmr.msra.gmra.mrb[4].mxu0 %v2815_v57  ;;  %1725 = vmatmul.mubr.f32.vlgmr.msra.gmra.mrb[4].mxu1 %v2815_v57 }
 0x22f   :  { %2073 = vmatpush1.bf16.msra.mxu0 %v2490_v9  ;;  %2104 = vmatpush3.bf16.msra.mxu1 %v2549_v29 }
 0x230   :  { %2075 = vmatprep.subr.bf16.mxu0 %v2492_v10  ;;  %2105 = vmatprep.subr.bf16.mxu1 %v2433_v3 }
 0x231   :  { %657 = vmatprep.mubr.f32.mxu0 %v2434_v4  ;;  %1759 = vmatprep.mubr.msk.f32.mxu1 %vm2435_vm0, %v2434_v4 }
 0x233   :  { %2077 = vmatpush1.bf16.msra.mxu0 %v2508_v15  ;;  %2107 = vmatpush3.bf16.msra.mxu1 %v2573_v37 }
 0x234   :  { %2079 = vmatprep.subr.bf16.mxu0 %v2511_v16  ;;  %2108 = vmatprep.subr.bf16.mxu1 %v2433_v3 }
 0x237   :  { %2081 = vmatpush1.bf16.msra.mxu0 %v2526_v21  ;;  %2110 = vmatpush3.bf16.msra.mxu1 %v2601_v46 }
 0x238   :  { %2083 = vmatprep.subr.bf16.mxu0 %v2529_v22  ;;  %2111 = vmatprep.subr.bf16.mxu1 %v2433_v3 }
 0x23b   :  { %2085 = vmatpush1.bf16.msra.mxu0 %v2555_v31  ;;  %2113 = vmatpush3.bf16.msra.mxu1 %v2629_v55 }
 0x23c   :  { %2087 = vmatprep.subr.bf16.mxu0 %v2561_v33  ;;  %2114 = vmatprep.subr.bf16.mxu1 %v2433_v3 }
 0x23f   :  { %2089 = vmatpush1.bf16.msra.mxu0 %v2586_v41  ;;  %2116 = vmatpush3.bf16.msra.mxu1 %v2654_v63 }
 0x240   :  { %2091 = vmatprep.subr.bf16.mxu0 %v2589_v42  ;;  %2117 = vmatprep.subr.bf16.mxu1 %v2433_v3 }
 0x243   :  { %2093 = vmatpush1.bf16.msra.mxu0 %v2614_v50  ;;  %2119 = vmatpush3.bf16.msra.mxu1 %v2668_v6 }
 0x244   :  { %2095 = vmatprep.subr.bf16.mxu0 %v2617_v51  ;;  %2120 = vmatprep.subr.bf16.mxu1 %v2433_v3 }
 0x247   :  { %2097 = vmatpush1.bf16.msra.mxu0 %v2642_v59  ;;  %2122 = vmatpush3.bf16.msra.mxu1 %v2684_v12 }
 0x248   :  { %2099 = vmatprep.subr.bf16.mxu0 %v2645_v60  ;;  %2123 = vmatprep.subr.bf16.mxu1 %v2433_v3 }
 0x24b   :  { %2101 = vmatpush1.bf16.msra.mxu0 %v2664_v2  ;;  %2125 = vmatpush3.bf16.msra.mxu1 %v2698_v17 }
 0x24c   :  { %2127 = vmatprep.subr.bf16.mxu0 %v2477_v5  ;;  %2158 = vmatprep.subr.bf16.mxu1 %v2433_v3 }
 0x301   :  { %v491_v58 = vpop.f32.mrb[4].mxu0  ;;  %v562_v62 = vpop.f32.mrb[4].mxu1 }
 0x302   :  { %v492_v0 = vadd.f32 %v491_v58, %v2740_v25  ;;  %v493_v1 = vpop.f32.mrb[5].mxu0  ;;  %v1726_v7 = vpop.f32.mrb[5].mxu1  ;;  %v563_v28 = vadd.f32 %v562_v62, %v2752_v49  ;;  %v1457_v58 = vld [vmem:[%s3117_s0 + $0x50] sm:$0xff] }
 0x303   :  { %v494_v8 = vadd.f32 %v493_v1, %v2742_v26 }
 0x304   :  { %v570_v13 = vadd.f32 %v1450_v61, %v492_v0 }
 0x305   :  { %v577_v18 = vadd.f32 %v1451_v11, %v494_v8 }
 0x306   :  { %v1453_v14 = vmul.f32 -1.442695, %v570_v13 }
 0x307   :  { %v1454_v19 = vmul.f32 -1.442695, %v577_v18  ;;  %v1458_v18 = vld [vmem:[%s3117_s0 + $0x58] sm:$0xff] }
 0x308   :  { %2373 = vpow2.f32 %v1453_v14 }
 0x309   :  { %2375 = vpow2.f32 %v1454_v19 }
 0x312   :  { %v2374_v20 = vpop.eup %2373 }
 0x313   :  { %v574_v23 = vadd.f32 1.0, %v2374_v20  ;;  %v2376_v24 = vpop.eup %2375 }
 0x314   :  { %v581_v27 = vadd.f32 1.0, %v2376_v24 }
 0x315   :  { %2377 = vrcp.f32 %v574_v23 }
 0x316   :  { %2379 = vrcp.f32 %v581_v27 }
 0x31f   :  { %v2378_v30 = vpop.eup %2377 }
 0x320   :  { %v584_v34 = vmul.f32 %v2378_v30, %v563_v28  ;;  %v2380_v36 = vpop.eup %2379 }
 0x321   :  { %v587_v38 = vsub.f32 1.0, %v2380_v36  ;;  %v589_v43 = vmul.f32 %v2380_v36, %v2815_v57 }
 0x322   :  { %v585_v35 = vadd.f32 %v1452_v32, %v584_v34 }
 0x324   :  { %2381 = vtanh.f32 %v585_v35  ;;  %v1462_v35 = vld [vmem:[%s3117_s0 + $0x60] sm:$0xff] }
 0x32e   :  { %v2382_v39 = vpop.eup %2381 }
 0x32f   :  { %v588_v40 = vmul.f32 %v2382_v39, %v587_v38 }
 0x331   :  { %v2871_v44 = vadd.f32 %v589_v43, %v588_v40 }
 0x333   :  { %1455 = vst [vmem:[%s3118_s4 + $0x10] sm:$0xff] %v2871_v44  ;;  %658 = vmatmul.mubr.f32.vlgmr.msra.gmra.mrb[6].mxu0 %v2871_v44  ;;  %1760 = vmatmul.mubr.f32.vlgmr.msra.gmra.mrb[6].mxu1 %v2871_v44 }
 0x334   :  { %2129 = vmatpush1.bf16.msra.mxu0 %v2490_v9  ;;  %2160 = vmatpush3.bf16.msra.mxu1 %v2549_v29 }
 0x335   :  { %2131 = vmatprep.subr.bf16.mxu0 %v2492_v10  ;;  %2161 = vmatprep.subr.bf16.mxu1 %v2433_v3 }
 0x336   :  { %825 = vmatprep.mubr.f32.mxu0 %v2434_v4  ;;  %1794 = vmatprep.mubr.msk.f32.mxu1 %vm2435_vm0, %v2434_v4 }
 0x338   :  { %2133 = vmatpush1.bf16.msra.mxu0 %v2508_v15  ;;  %2163 = vmatpush3.bf16.msra.mxu1 %v2573_v37 }
 0x339   :  { %2135 = vmatprep.subr.bf16.mxu0 %v2511_v16  ;;  %2164 = vmatprep.subr.bf16.mxu1 %v2433_v3 }
 0x33c   :  { %2137 = vmatpush1.bf16.msra.mxu0 %v2526_v21  ;;  %2166 = vmatpush3.bf16.msra.mxu1 %v2601_v46 }
 0x33d   :  { %2139 = vmatprep.subr.bf16.mxu0 %v2529_v22  ;;  %2167 = vmatprep.subr.bf16.mxu1 %v2433_v3 }
 0x340   :  { %2141 = vmatpush1.bf16.msra.mxu0 %v2555_v31  ;;  %2169 = vmatpush3.bf16.msra.mxu1 %v2629_v55 }
 0x341   :  { %2143 = vmatprep.subr.bf16.mxu0 %v2561_v33  ;;  %2170 = vmatprep.subr.bf16.mxu1 %v2433_v3 }
 0x344   :  { %2145 = vmatpush1.bf16.msra.mxu0 %v2586_v41  ;;  %2172 = vmatpush3.bf16.msra.mxu1 %v2654_v63 }
 0x345   :  { %2147 = vmatprep.subr.bf16.mxu0 %v2589_v42  ;;  %2173 = vmatprep.subr.bf16.mxu1 %v2433_v3 }
 0x348   :  { %2149 = vmatpush1.bf16.msra.mxu0 %v2614_v50  ;;  %2175 = vmatpush3.bf16.msra.mxu1 %v2668_v6 }
 0x349   :  { %2151 = vmatprep.subr.bf16.mxu0 %v2617_v51  ;;  %2176 = vmatprep.subr.bf16.mxu1 %v2433_v3 }
 0x34c   :  { %2153 = vmatpush1.bf16.msra.mxu0 %v2642_v59  ;;  %2178 = vmatpush3.bf16.msra.mxu1 %v2684_v12 }
 0x34d   :  { %2155 = vmatprep.subr.bf16.mxu0 %v2645_v60  ;;  %2179 = vmatprep.subr.bf16.mxu1 %v2433_v3 }
 0x350   :  { %2157 = vmatpush1.bf16.msra.mxu0 %v2664_v2  ;;  %2181 = vmatpush3.bf16.msra.mxu1 %v2698_v17 }
 0x351   :  { %2183 = vmatprep.subr.bf16.mxu0 %v2477_v5  ;;  %2214 = vmatprep.subr.bf16.mxu1 %v2433_v3 }
 0x406   :  { %v659_v45 = vpop.f32.mrb[6].mxu0  ;;  %v730_v48 = vpop.f32.mrb[6].mxu1 }
 0x407   :  { %v660_v52 = vadd.f32 %v659_v45, %v2740_v25  ;;  %v661_v53 = vpop.f32.mrb[7].mxu0  ;;  %v1761_v54 = vpop.f32.mrb[7].mxu1  ;;  %v731_v11 = vadd.f32 %v730_v48, %v2752_v49  ;;  %v1463_v45 = vld [vmem:[%s3117_s0 + $0x68] sm:$0xff] }
 0x408   :  { %v662_v56 = vadd.f32 %v661_v53, %v2742_v26 }
 0x409   :  { %v738_v57 = vadd.f32 %v1456_v47, %v660_v52 }
 0x40a   :  { %v745_v62 = vadd.f32 %v1457_v58, %v662_v56 }
 0x40b   :  { %v1459_v61 = vmul.f32 -1.442695, %v738_v57 }
 0x40c   :  { %v1460_v0 = vmul.f32 -1.442695, %v745_v62  ;;  %v1464_v62 = vld [vmem:[%s3117_s0 + $0x70] sm:$0xff] }
 0x40d   :  { %2383 = vpow2.f32 %v1459_v61 }
 0x40e   :  { %2385 = vpow2.f32 %v1460_v0 }
 0x417   :  { %v2384_v1 = vpop.eup %2383 }
 0x418   :  { %v742_v7 = vadd.f32 1.0, %v2384_v1  ;;  %v2386_v8 = vpop.eup %2385 }
 0x419   :  { %v749_v13 = vadd.f32 1.0, %v2386_v8 }
 0x41a   :  { %2387 = vrcp.f32 %v742_v7 }
 0x41b   :  { %2389 = vrcp.f32 %v749_v13 }
 0x424   :  { %v2388_v14 = vpop.eup %2387 }
 0x425   :  { %v752_v19 = vmul.f32 %v2388_v14, %v731_v11  ;;  %v2390_v23 = vpop.eup %2389 }
 0x426   :  { %v755_v24 = vsub.f32 1.0, %v2390_v23  ;;  %v757_v30 = vmul.f32 %v2390_v23, %v2871_v44 }
 0x427   :  { %v753_v20 = vadd.f32 %v1458_v18, %v752_v19 }
 0x429   :  { %2391 = vtanh.f32 %v753_v20  ;;  %v1468_v20 = vld [vmem:[%s3117_s0 + $0x78] sm:$0xff] }
 0x433   :  { %v2392_v27 = vpop.eup %2391 }
 0x434   :  { %v756_v28 = vmul.f32 %v2392_v27, %v755_v24 }
 0x436   :  { %v2927_v32 = vadd.f32 %v757_v30, %v756_v28 }
 0x438   :  { %1461 = vst [vmem:[%s3118_s4 + $0x18] sm:$0xff] %v2927_v32  ;;  %826 = vmatmul.mubr.f32.vlgmr.msra.gmra.mrb[8].mxu0 %v2927_v32  ;;  %1795 = vmatmul.mubr.f32.vlgmr.msra.gmra.mrb[8].mxu1 %v2927_v32 }
 0x439   :  { %2185 = vmatpush1.bf16.msra.mxu0 %v2490_v9  ;;  %2216 = vmatpush3.bf16.msra.mxu1 %v2549_v29 }
 0x43a   :  { %2187 = vmatprep.subr.bf16.mxu0 %v2492_v10  ;;  %2217 = vmatprep.subr.bf16.mxu1 %v2433_v3 }
 0x43b   :  { %993 = vmatprep.mubr.f32.mxu0 %v2434_v4  ;;  %1829 = vmatprep.mubr.msk.f32.mxu1 %vm2435_vm0, %v2434_v4 }
 0x43d   :  { %2189 = vmatpush1.bf16.msra.mxu0 %v2508_v15  ;;  %2219 = vmatpush3.bf16.msra.mxu1 %v2573_v37 }
 0x43e   :  { %2191 = vmatprep.subr.bf16.mxu0 %v2511_v16  ;;  %2220 = vmatprep.subr.bf16.mxu1 %v2433_v3 }
 0x441   :  { %2193 = vmatpush1.bf16.msra.mxu0 %v2526_v21  ;;  %2222 = vmatpush3.bf16.msra.mxu1 %v2601_v46 }
 0x442   :  { %2195 = vmatprep.subr.bf16.mxu0 %v2529_v22  ;;  %2223 = vmatprep.subr.bf16.mxu1 %v2433_v3 }
 0x445   :  { %2197 = vmatpush1.bf16.msra.mxu0 %v2555_v31  ;;  %2225 = vmatpush3.bf16.msra.mxu1 %v2629_v55 }
 0x446   :  { %2199 = vmatprep.subr.bf16.mxu0 %v2561_v33  ;;  %2226 = vmatprep.subr.bf16.mxu1 %v2433_v3 }
 0x449   :  { %2201 = vmatpush1.bf16.msra.mxu0 %v2586_v41  ;;  %2228 = vmatpush3.bf16.msra.mxu1 %v2654_v63 }
 0x44a   :  { %2203 = vmatprep.subr.bf16.mxu0 %v2589_v42  ;;  %2229 = vmatprep.subr.bf16.mxu1 %v2433_v3 }
 0x44d   :  { %2205 = vmatpush1.bf16.msra.mxu0 %v2614_v50  ;;  %2231 = vmatpush3.bf16.msra.mxu1 %v2668_v6 }
 0x44e   :  { %2207 = vmatprep.subr.bf16.mxu0 %v2617_v51  ;;  %2232 = vmatprep.subr.bf16.mxu1 %v2433_v3 }
 0x451   :  { %2209 = vmatpush1.bf16.msra.mxu0 %v2642_v59  ;;  %2234 = vmatpush3.bf16.msra.mxu1 %v2684_v12 }
 0x452   :  { %2211 = vmatprep.subr.bf16.mxu0 %v2645_v60  ;;  %2235 = vmatprep.subr.bf16.mxu1 %v2433_v3 }
 0x455   :  { %2213 = vmatpush1.bf16.msra.mxu0 %v2664_v2  ;;  %2237 = vmatpush3.bf16.msra.mxu1 %v2698_v17 }
 0x456   :  { %2239 = vmatprep.subr.bf16.mxu0 %v2477_v5  ;;  %2270 = vmatprep.subr.bf16.mxu1 %v2433_v3 }
 0x50b   :  { %v827_v34 = vpop.f32.mrb[8].mxu0  ;;  %v898_v36 = vpop.f32.mrb[8].mxu1 }
 0x50c   :  { %v828_v38 = vadd.f32 %v827_v34, %v2740_v25  ;;  %v829_v39 = vpop.f32.mrb[9].mxu0  ;;  %v1796_v40 = vpop.f32.mrb[9].mxu1  ;;  %v899_v58 = vadd.f32 %v898_v36, %v2752_v49  ;;  %v1469_v34 = vld [vmem:[%s3117_s0 + $0x80] sm:$0xff] }
 0x50d   :  { %v830_v43 = vadd.f32 %v829_v39, %v2742_v26 }
 0x50e   :  { %v906_v44 = vadd.f32 %v1462_v35, %v828_v38 }
 0x50f   :  { %v913_v48 = vadd.f32 %v1463_v45, %v830_v43 }
 0x510   :  { %v1465_v47 = vmul.f32 -1.442695, %v906_v44 }
 0x511   :  { %v1466_v52 = vmul.f32 -1.442695, %v913_v48 }
 0x512   :  { %2393 = vpow2.f32 %v1465_v47  ;;  %v1470_v47 = vld [vmem:[%s3117_s0 + $0x88] sm:$0xff] }
 0x513   :  { %2395 = vpow2.f32 %v1466_v52 }
 0x51c   :  { %v2394_v53 = vpop.eup %2393 }
 0x51d   :  { %v910_v54 = vadd.f32 1.0, %v2394_v53  ;;  %v2396_v56 = vpop.eup %2395 }
 0x51e   :  { %v917_v57 = vadd.f32 1.0, %v2396_v56 }
 0x51f   :  { %2397 = vrcp.f32 %v910_v54 }
 0x520   :  { %2399 = vrcp.f32 %v917_v57 }
 0x529   :  { %v2398_v61 = vpop.eup %2397 }
 0x52a   :  { %v920_v0 = vmul.f32 %v2398_v61, %v899_v58  ;;  %v2400_v7 = vpop.eup %2399 }
 0x52b   :  { %v923_v8 = vsub.f32 1.0, %v2400_v7  ;;  %v925_v14 = vmul.f32 %v2400_v7, %v2927_v32  ;;  %v1480_v7 = vld [vmem:[%s3117_s0 + $0xa8] sm:$0xff] }
 0x52c   :  { %v921_v1 = vadd.f32 %v1464_v62, %v920_v0 }
 0x52e   :  { %2401 = vtanh.f32 %v921_v1 }
 0x538   :  { %v2402_v13 = vpop.eup %2401 }
 0x539   :  { %v924_v11 = vmul.f32 %v2402_v13, %v923_v8 }
 0x53b   :  { %v2983_v18 = vadd.f32 %v925_v14, %v924_v11 }
 0x53d   :  { %1467 = vst [vmem:[%s3118_s4 + $0x20] sm:$0xff] %v2983_v18  ;;  %994 = vmatmul.mubr.f32.vlgmr.msra.gmra.mrb[10].mxu0 %v2983_v18  ;;  %1830 = vmatmul.mubr.f32.vlgmr.msra.gmra.mrb[10].mxu1 %v2983_v18 }
 0x53e   :  { %2241 = vmatpush1.bf16.msra.mxu0 %v2490_v9  ;;  %2272 = vmatpush3.bf16.msra.mxu1 %v2549_v29 }
 0x53f   :  { %2243 = vmatprep.subr.bf16.mxu0 %v2492_v10  ;;  %2273 = vmatprep.subr.bf16.mxu1 %v2433_v3 }
 0x540   :  { %1161 = vmatprep.mubr.f32.mxu0 %v2434_v4  ;;  %1864 = vmatprep.mubr.msk.f32.mxu1 %vm2435_vm0, %v2434_v4 }
 0x542   :  { %2245 = vmatpush1.bf16.msra.mxu0 %v2508_v15  ;;  %2275 = vmatpush3.bf16.msra.mxu1 %v2573_v37 }
 0x543   :  { %2247 = vmatprep.subr.bf16.mxu0 %v2511_v16  ;;  %2276 = vmatprep.subr.bf16.mxu1 %v2433_v3 }
 0x546   :  { %2249 = vmatpush1.bf16.msra.mxu0 %v2526_v21  ;;  %2278 = vmatpush3.bf16.msra.mxu1 %v2601_v46 }
 0x547   :  { %2251 = vmatprep.subr.bf16.mxu0 %v2529_v22  ;;  %2279 = vmatprep.subr.bf16.mxu1 %v2433_v3 }
 0x54a   :  { %2253 = vmatpush1.bf16.msra.mxu0 %v2555_v31  ;;  %2281 = vmatpush3.bf16.msra.mxu1 %v2629_v55 }
 0x54b   :  { %2255 = vmatprep.subr.bf16.mxu0 %v2561_v33  ;;  %2282 = vmatprep.subr.bf16.mxu1 %v2433_v3 }
 0x54e   :  { %2257 = vmatpush1.bf16.msra.mxu0 %v2586_v41  ;;  %2284 = vmatpush3.bf16.msra.mxu1 %v2654_v63 }
 0x54f   :  { %2259 = vmatprep.subr.bf16.mxu0 %v2589_v42  ;;  %2285 = vmatprep.subr.bf16.mxu1 %v2433_v3 }
 0x552   :  { %2261 = vmatpush1.bf16.msra.mxu0 %v2614_v50  ;;  %2287 = vmatpush3.bf16.msra.mxu1 %v2668_v6 }
 0x553   :  { %2263 = vmatprep.subr.bf16.mxu0 %v2617_v51  ;;  %2288 = vmatprep.subr.bf16.mxu1 %v2433_v3 }
 0x556   :  { %2265 = vmatpush1.bf16.msra.mxu0 %v2642_v59  ;;  %2290 = vmatpush3.bf16.msra.mxu1 %v2684_v12 }
 0x557   :  { %2267 = vmatprep.subr.bf16.mxu0 %v2645_v60  ;;  %2291 = vmatprep.subr.bf16.mxu1 %v2433_v3 }
 0x55a   :  { %2269 = vmatpush1.bf16.msra.mxu0 %v2664_v2  ;;  %2293 = vmatpush3.bf16.msra.mxu1 %v2698_v17 }
 0x55b   :  { %2295 = vmatprep.subr.bf16.mxu0 %v2477_v5  ;;  %2326 = vmatprep.subr.bf16.mxu1 %v2433_v3 }
 0x610   :  { %v995_v19 = vpop.f32.mrb[10].mxu0  ;;  %v1066_v23 = vpop.f32.mrb[10].mxu1 }
 0x611   :  { %v996_v24 = vadd.f32 %v995_v19, %v2740_v25  ;;  %v997_v27 = vpop.f32.mrb[11].mxu0  ;;  %v1831_v28 = vpop.f32.mrb[11].mxu1  ;;  %v1067_v44 = vadd.f32 %v1066_v23, %v2752_v49 }
 0x612   :  { %v998_v30 = vadd.f32 %v997_v27, %v2742_v26 }
 0x613   :  { %v1074_v32 = vadd.f32 %v1468_v20, %v996_v24  ;;  %v1481_v20 = vld [vmem:[%s3117_s0 + $0xb0] sm:$0xff] }
 0x614   :  { %v1081_v35 = vadd.f32 %v1469_v34, %v998_v30 }
 0x615   :  { %v1471_v5 = vmul.f32 -1.442695, %v1074_v32 }
 0x616   :  { %v1472_v36 = vmul.f32 -1.442695, %v1081_v35 }
 0x617   :  { %2403 = vpow2.f32 %v1471_v5 }
 0x618   :  { %2405 = vpow2.f32 %v1472_v36 }
 0x621   :  { %v2404_v38 = vpop.eup %2403 }
 0x622   :  { %v1078_v39 = vadd.f32 1.0, %v2404_v38  ;;  %v2406_v40 = vpop.eup %2405 }
 0x623   :  { %v1085_v43 = vadd.f32 1.0, %v2406_v40 }
 0x624   :  { %2407 = vrcp.f32 %v1078_v39 }
 0x625   :  { %2409 = vrcp.f32 %v1085_v43 }
 0x62e   :  { %v2408_v45 = vpop.eup %2407 }
 0x62f   :  { %v1088_v48 = vmul.f32 %v2408_v45, %v1067_v44  ;;  %v2410_v53 = vpop.eup %2409 }
 0x630   :  { %v1091_v54 = vsub.f32 1.0, %v2410_v53  ;;  %v1093_v58 = vmul.f32 %v2410_v53, %v2983_v18 }
 0x631   :  { %v1089_v52 = vadd.f32 %v1470_v47, %v1088_v48 }
 0x633   :  { %2411 = vtanh.f32 %v1089_v52 }
 0x63d   :  { %v2412_v56 = vpop.eup %2411 }
 0x63e   :  { %v1092_v57 = vmul.f32 %v2412_v56, %v1091_v54 }
 0x640   :  { %v3039_v61 = vadd.f32 %v1093_v58, %v1092_v57 }
 0x642   :  { %1473 = vst [vmem:[%s3118_s4 + $0x28] sm:$0xff] %v3039_v61  ;;  %1162 = vmatmul.mubr.f32.vlgmr.msra.gmra.mrb[12].mxu0 %v3039_v61  ;;  %1865 = vmatmul.mubr.f32.vlgmr.msra.gmra.mrb[12].mxu1 %v3039_v61 }
 0x643   :  { %2297 = vmatpush1.bf16.msra.mxu0 %v2490_v9  ;;  %2328 = vmatpush3.bf16.msra.mxu1 %v2549_v29  ;;  %v1474_v9 = vld [vmem:[%s3117_s0 + $0x90] sm:$0xff] }
 0x644   :  { %2299 = vmatprep.subr.bf16.mxu0 %v2492_v10  ;;  %2329 = vmatprep.subr.bf16.mxu1 %v2433_v3 }
 0x645   :  { %1329 = vmatprep.mubr.f32.mxu0 %v2434_v4  ;;  %1899 = vmatprep.mubr.msk.f32.mxu1 %vm2435_vm0, %v2434_v4 }
 0x647   :  { %2301 = vmatpush1.bf16.msra.mxu0 %v2508_v15  ;;  %2331 = vmatpush3.bf16.msra.mxu1 %v2573_v37 }
 0x648   :  { %2303 = vmatprep.subr.bf16.mxu0 %v2511_v16  ;;  %2332 = vmatprep.subr.bf16.mxu1 %v2433_v3 }
 0x64b   :  { %2305 = vmatpush1.bf16.msra.mxu0 %v2526_v21  ;;  %2334 = vmatpush3.bf16.msra.mxu1 %v2601_v46 }
 0x64c   :  { %2307 = vmatprep.subr.bf16.mxu0 %v2529_v22  ;;  %2335 = vmatprep.subr.bf16.mxu1 %v2433_v3 }
 0x64f   :  { %2309 = vmatpush1.bf16.msra.mxu0 %v2555_v31  ;;  %2337 = vmatpush3.bf16.msra.mxu1 %v2629_v55 }
 0x650   :  { %2311 = vmatprep.subr.bf16.mxu0 %v2561_v33  ;;  %2338 = vmatprep.subr.bf16.mxu1 %v2433_v3 }
 0x653   :  { %2313 = vmatpush1.bf16.msra.mxu0 %v2586_v41  ;;  %2340 = vmatpush3.bf16.msra.mxu1 %v2654_v63 }
 0x654   :  { %2315 = vmatprep.subr.bf16.mxu0 %v2589_v42  ;;  %2341 = vmatprep.subr.bf16.mxu1 %v2433_v3 }
 0x657   :  { %2317 = vmatpush1.bf16.msra.mxu0 %v2614_v50  ;;  %2343 = vmatpush3.bf16.msra.mxu1 %v2668_v6 }
 0x658   :  { %2319 = vmatprep.subr.bf16.mxu0 %v2617_v51  ;;  %2344 = vmatprep.subr.bf16.mxu1 %v2433_v3 }
 0x65b   :  { %2321 = vmatpush1.bf16.msra.mxu0 %v2642_v59  ;;  %2346 = vmatpush3.bf16.msra.mxu1 %v2684_v12  ;;  %v1476_v59 = vld [vmem:[%s3117_s0 + $0xa0] sm:$0xff] }
 0x65c   :  { %2323 = vmatprep.subr.bf16.mxu0 %v2645_v60  ;;  %2347 = vmatprep.subr.bf16.mxu1 %v2433_v3  ;;  %v1475_v3 = vld [vmem:[%s3117_s0 + $0x98] sm:$0xff] }
 0x65f   :  { %2325 = vmatpush1.bf16.msra.mxu0 %v2664_v2  ;;  %2349 = vmatpush3.bf16.msra.mxu1 %v2698_v17 }
 0x715   :  { %v1163_v4 = vpop.f32.mrb[12].mxu0  ;;  %v1234_v10 = vpop.f32.mrb[12].mxu1 }
 0x716   :  { %v1164_v15 = vadd.f32 %v1163_v4, %v2740_v25  ;;  %v1165_v16 = vpop.f32.mrb[13].mxu0  ;;  %v1866_v21 = vpop.f32.mrb[13].mxu1  ;;  %v1235_v51 = vadd.f32 %v1234_v10, %v2752_v49 }
 0x717   :  { %v1166_v22 = vadd.f32 %v1165_v16, %v2742_v26 }
 0x718   :  { %v1242_v29 = vadd.f32 %v1474_v9, %v1164_v15 }
 0x719   :  { %v1249_v33 = vadd.f32 %v1475_v3, %v1166_v22 }
 0x71a   :  { %v1477_v31 = vmul.f32 -1.442695, %v1242_v29 }
 0x71b   :  { %v1478_v37 = vmul.f32 -1.442695, %v1249_v33 }
 0x71c   :  { %2413 = vpow2.f32 %v1477_v31 }
 0x71d   :  { %2415 = vpow2.f32 %v1478_v37 }
 0x726   :  { %v2414_v41 = vpop.eup %2413 }
 0x727   :  { %v1246_v42 = vadd.f32 1.0, %v2414_v41  ;;  %v2416_v46 = vpop.eup %2415 }
 0x728   :  { %v1253_v50 = vadd.f32 1.0, %v2416_v46 }
 0x729   :  { %2417 = vrcp.f32 %v1246_v42 }
 0x72a   :  { %2419 = vrcp.f32 %v1253_v50 }
 0x733   :  { %v2418_v55 = vpop.eup %2417 }
 0x734   :  { %v1256_v60 = vmul.f32 %v2418_v55, %v1235_v51  ;;  %v2420_v2 = vpop.eup %2419 }
 0x735   :  { %v1259_v6 = vsub.f32 1.0, %v2420_v2  ;;  %v1261_v62 = vmul.f32 %v2420_v2, %v3039_v61 }
 0x736   :  { %v1257_v63 = vadd.f32 %v1476_v59, %v1256_v60 }
 0x738   :  { %2421 = vtanh.f32 %v1257_v63 }
 0x742   :  { %v2422_v12 = vpop.eup %2421 }
 0x743   :  { %v1260_v17 = vmul.f32 %v2422_v12, %v1259_v6 }
 0x745   :  { %v1262_v0 = vadd.f32 %v1261_v62, %v1260_v17 }
 0x747   :  { %1479 = vst [vmem:[%s3118_s4 + $0x30] sm:$0xff] %v1262_v0  ;;  %1330 = vmatmul.mubr.f32.vlgmr.msra.gmra.mrb[14].mxu0 %v1262_v0  ;;  %1900 = vmatmul.mubr.f32.vlgmr.msra.gmra.mrb[14].mxu1 %v1262_v0 }
 0x81a   :  { %v1331_v1 = vpop.f32.mrb[14].mxu0  ;;  %v1402_v8 = vpop.f32.mrb[14].mxu1 }
 0x81b   :  { %v1332_v13 = vadd.f32 %v1331_v1, %v2740_v25  ;;  %v1333_v11 = vpop.f32.mrb[15].mxu0  ;;  %v1901_v14 = vpop.f32.mrb[15].mxu1  ;;  %v1403_v25 = vadd.f32 %v1402_v8, %v2752_v49 }
 0x81c   :  { %v1334_v18 = vadd.f32 %v1333_v11, %v2742_v26  ;;  %v1482_v26 = vld [vmem:[%s3117_s0 + $0xb8] sm:$0xff] }
 0x81d   :  { %v1410_v19 = vadd.f32 %v1480_v7, %v1332_v13 }
 0x81e   :  { %v1417_v24 = vadd.f32 %v1481_v20, %v1334_v18 }
 0x81f   :  { %v1483_v23 = vmul.f32 -1.442695, %v1410_v19 }
 0x820   :  { %v1484_v27 = vmul.f32 -1.442695, %v1417_v24 }
 0x821   :  { %2423 = vpow2.f32 %v1483_v23 }
 0x822   :  { %2425 = vpow2.f32 %v1484_v27 }
 0x82b   :  { %v2424_v28 = vpop.eup %2423 }
 0x82c   :  { %v1414_v30 = vadd.f32 1.0, %v2424_v28  ;;  %v2426_v32 = vpop.eup %2425 }
 0x82d   :  { %v1421_v34 = vadd.f32 1.0, %v2426_v32 }
 0x82e   :  { %2427 = vrcp.f32 %v1414_v30 }
 0x82f   :  { %2429 = vrcp.f32 %v1421_v34 }
 0x838   :  { %v2428_v5 = vpop.eup %2427 }
 0x839   :  { %v1424_v35 = vmul.f32 %v2428_v5, %v1403_v25  ;;  %v2430_v38 = vpop.eup %2429 }
 0x83a   :  { %v1427_v39 = vsub.f32 1.0, %v2430_v38  ;;  %v1429_v44 = vmul.f32 %v2430_v38, %v1262_v0 }
 0x83b   :  { %v1425_v36 = vadd.f32 %v1482_v26, %v1424_v35 }
 0x83d   :  { %2431 = vtanh.f32 %v1425_v36 }
 0x847   :  { %v2432_v40 = vpop.eup %2431 }
 0x848   :  { %v1428_v43 = vmul.f32 %v2432_v40, %v1427_v39 }
 0x84a   :  { %v1430_v45 = vadd.f32 %v1429_v44, %v1428_v43 }
 0x84c   :  { %1485 = vst [vmem:[%s3118_s4 + $0x38] sm:$0xff] %v1430_v45  ;;  %1433 = vst [vmem:[%s3119_s5] sm:$0xff] %v1430_v45 }

</bundles_post_ra>
